<compile_context>
chip_gen: v7x
topology: tpu7x:2x2x1
jax: 0.10.0
libtpu: 0.0.40
codegen_flags: <defaults>
</compile_context>

<pallas_src>
import numpy as np
import jax
import jax.numpy as jnp
from jax.experimental import pallas as pl
from jax.experimental.pallas import tpu as pltpu


def _round_up(x, m):
    return ((x + m - 1) // m) * m


# ----------------------------------------------------------------------------
# Pallas kernel: whole forward = 5 matmuls + relu / max / sigmoid.
# ----------------------------------------------------------------------------
def autoencoder_kernel(x_ref,
                       a1_ref, c1_ref,
                       a2_ref, c2_ref,
                       a3_ref, c3_ref,
                       a4_ref, c4_ref,
                       a5_ref, c5_ref,
                       out_ref):
    def affine(h_bf16, w_ref, b_ref):
        # bf16 x bf16 on the MXU, f32 accumulation, f32 bias add.
        return jnp.dot(h_bf16, w_ref[...],
                       preferred_element_type=jnp.float32) + b_ref[...]

    def split_max(v, n_total):
        # [even | odd] halves are each padded to a multiple of 128 -> aligned.
        half = n_total // 2
        return jnp.maximum(v[:, :half], v[:, half:])

    relu = lambda v: jnp.maximum(v, 0.0)

    # encoder: conv1 -> ReLU -> MaxPool(1,2)   (one fused [even|odd] matmul)
    h = relu(split_max(affine(x_ref[...], a1_ref, c1_ref), a1_ref.shape[1]))

    # encoder: conv2 -> conv3 -> ReLU           (conv2@conv3 pre-fused)
    h = relu(affine(h.astype(jnp.bfloat16), a2_ref, c2_ref))

    # decoder: conv4 -> MaxPool(1,2)
    h = split_max(affine(h.astype(jnp.bfloat16), a3_ref, c3_ref),
                  a3_ref.shape[1])

    # decoder: conv5 -> bilinear up x2 -> conv6 -> MaxPool(1,2) -> ReLU
    h = relu(split_max(affine(h.astype(jnp.bfloat16), a4_ref, c4_ref),
                       a4_ref.shape[1]))

    # decoder: conv7 -> AvgPool(1,5) -> Sigmoid  (bf16, lane-padded output)
    out_ref[...] = jax.nn.sigmoid(
        affine(h.astype(jnp.bfloat16), a5_ref, c5_ref)).astype(out_ref.dtype)


# ----------------------------------------------------------------------------
# Host-side (one-time) lowering of the module's ops to dense matrices acting on
# the channel-major flattening (index = c*W + w).
# ----------------------------------------------------------------------------
def _conv1x3_dense(w, b, W):
    """Conv2d(C_in,C_out,(1,3),stride=1,pad=(0,1)) as (C_in*W, C_out*W) matrix."""
    w = np.asarray(w, np.float64)            # (C_out, C_in, 1, 3)
    b = np.asarray(b, np.float64)
    C_out, C_in, _, K = w.shape
    M = np.zeros((C_in * W, C_out * W), np.float64)
    for k in range(K):
        for wo in range(W):
            wi = wo + k - 1                  # padding = 1
            if 0 <= wi < W:
                M[wi::W, wo::W] += w[:, :, 0, k].T
    return M, np.repeat(b, W)


def _maxpool2_selectors(C, W):
    """Even/odd column pickers so MaxPool(1,2) = max(h @ Se, h @ So)."""
    Wo = W // 2
    Se = np.zeros((C * W, C * Wo), np.float64)
    So = np.zeros((C * W, C * Wo), np.float64)
    for c in range(C):
        for wo in range(Wo):
            Se[c * W + 2 * wo, c * Wo + wo] = 1.0
            So[c * W + 2 * wo + 1, c * Wo + wo] = 1.0
    return Se, So


def _upsample2_dense(C, W_in):
    """nn.Upsample(scale_factor=(1,2), mode='bilinear', align_corners=False)."""
    W_out = 2 * W_in
    U1 = np.zeros((W_in, W_out), np.float64)
    for j in range(W_out):
        src = max(0.5 * (j + 0.5) - 0.5, 0.0)
        w0 = min(int(np.floor(src)), W_in - 1)
        w1 = min(w0 + 1, W_in - 1)
        lam = src - w0
        U1[w0, j] += 1.0 - lam
        U1[w1, j] += lam
    U = np.zeros((C * W_in, C * W_out), np.float64)
    for c in range(C):
        U[c * W_in:(c + 1) * W_in, c * W_out:(c + 1) * W_out] = U1
    return U


def _avgpool_dense(C, W_in, k):
    """nn.AvgPool2d((1,k)) (stride=k, no padding)."""
    W_out = W_in // k
    A1 = np.zeros((W_in, W_out), np.float64)
    for wo in range(W_out):
        A1[k * wo:k * wo + k, wo] = 1.0 / k
    A = np.zeros((C * W_in, C * W_out), np.float64)
    for c in range(C):
        A[c * W_in:(c + 1) * W_in, c * W_out:(c + 1) * W_out] = A1
    return A


def _pad2(M, rows, cols):
    out = np.zeros((rows, cols), np.float64)
    out[:M.shape[0], :M.shape[1]] = M
    return out


def _pad1(v, n):
    out = np.zeros((n,), np.float64)
    out[:v.shape[0]] = v
    return out


def build_fused_params(raw, W):
    """Precompute ALL fused, 128-aligned dense matrices (called once)."""
    W1, W2 = W // 2, W // 4
    W3 = W2 // 5
    d0, d1, d2, d3 = 12 * W, 16 * W1, 16 * W2, 11 * W3
    # 128-aligned activation widths (zero rows/cols -> results bit-identical).
    d0p, d1p, d2p, d3p = (_round_up(max(d, 128), 128) for d in (d0, d1, d2, d3))

    # encoder conv1 + (ReLU, MaxPool folded as fused [even|odd] selection)
    M1, b1 = _conv1x3_dense(raw["enc1_w"], raw["enc1_b"], W)       # 12W -> 16W
    Se0, So0 = _maxpool2_selectors(16, W)
    A1 = np.concatenate([_pad2(M1 @ Se0, d0p, d1p),
                         _pad2(M1 @ So0, d0p, d1p)], axis=1)
    c1 = np.concatenate([_pad1(b1 @ Se0, d1p), _pad1(b1 @ So0, d1p)])

    # encoder conv2 @ conv3 (no nonlinearity in between)
    M2, b2 = _conv1x3_dense(raw["enc2_w"], raw["enc2_b"], W1)
    M3, b3 = _conv1x3_dense(raw["enc3_w"], raw["enc3_b"], W1)
    A2 = _pad2(M2 @ M3, d1p, d1p)
    c2 = _pad1(b2 @ M3 + b3, d1p)

    # decoder conv4 + MaxPool (fused [even|odd])
    M4, b4 = _conv1x3_dense(raw["dec1_w"], raw["dec1_b"], W1)
    Se1, So1 = _maxpool2_selectors(16, W1)
    A3 = np.concatenate([_pad2(M4 @ Se1, d1p, d2p),
                         _pad2(M4 @ So1, d1p, d2p)], axis=1)
    c3 = np.concatenate([_pad1(b4 @ Se1, d2p), _pad1(b4 @ So1, d2p)])

    # decoder conv5 @ bilinear-up(x2) @ conv6, then MaxPool (fused [even|odd])
    M5, b5 = _conv1x3_dense(raw["dec2_w"], raw["dec2_b"], W2)
    U = _upsample2_dense(16, W2)                                    # 16W2 -> 16W1
    M6, b6 = _conv1x3_dense(raw["dec3_w"], raw["dec3_b"], W1)
    chain = M5 @ U @ M6
    bch = b5 @ U @ M6 + b6
    A4 = np.concatenate([_pad2(chain @ Se1, d2p, d2p),
                         _pad2(chain @ So1, d2p, d2p)], axis=1)
    c4 = np.concatenate([_pad1(bch @ Se1, d2p), _pad1(bch @ So1, d2p)])

    # decoder conv7 @ AvgPool(1,5); output lanes padded to a multiple of 128
    M7, b7 = _conv1x3_dense(raw["dec4_w"], raw["dec4_b"], W2)       # 16W2 -> 11W2
    Av = _avgpool_dense(11, W2, 5)                                  # 11W2 -> 11W3
    A5 = _pad2(M7 @ Av, d2p, d3p)
    c5 = _pad1(b7 @ Av, d3p)

    def wmat(m):  # weight matrices streamed as bf16 (DMA-byte + MXU-rate win)
        return jnp.asarray(np.asarray(m, np.float32), jnp.bfloat16)

    def bvec(b):  # biases stay f32, shaped (1, N) for broadcast add
        return jnp.asarray(np.asarray(b, np.float32)[None, :])

    return {"A1": wmat(A1), "c1": bvec(c1),
            "A2": wmat(A2), "c2": bvec(c2),
            "A3": wmat(A3), "c3": bvec(c3),
            "A4": wmat(A4), "c4": bvec(c4),
            "A5": wmat(A5), "c5": bvec(c5)}


# ----------------------------------------------------------------------------
# Wrapper: batch-gridded pallas_call over N = B*H rows.
# ----------------------------------------------------------------------------
def autoencoder_forward(x, fused):
    B, C, H, W = x.shape
    assert C == 12 and W % 4 == 0 and (W // 4) >= 5
    W3 = (W // 4) // 5
    n_out = 11 * W3
    n_in = C * W
    N = B * H

    d0p = fused["A1"].shape[0]       # 128-aligned input width
    d3p = fused["A5"].shape[1]       # 128-aligned output width

    # Channel-major flatten.  For H==1 (this model's use) the transpose is
    # free; for H>1 it is one extra HBM pass that XLA fuses with the cast/pad.
    x2 = jnp.transpose(x, (0, 2, 1, 3)).reshape(N, n_in)

    # Batch tile: 512 rows (~85% of HBM roofline for tiled kernels, fits every
    # generation's VMEM with ~10 MiB peak).  Keep >=2 grid steps for large N so
    # the "parallel" batch axis can be split across v7x's two TensorCores, and
    # keep TB a multiple of 16 for bf16 sublane packing.
    TB_MAX = 512
    if N > 2 * TB_MAX:
        TB = TB_MAX
    elif N > 32:
        TB = _round_up((N + 1) // 2, 16)
    else:
        TB = _round_up(max(N, 16), 16)
    N_pad = _round_up(N, TB)

    # bf16 input streaming + zero-pad rows (batch) and lanes (480 -> 512).
    x2 = jnp.pad(x2, ((0, N_pad - N), (0, d0p - n_in))).astype(jnp.bfloat16)

    weights = (fused["A1"], fused["c1"], fused["A2"], fused["c2"],
               fused["A3"], fused["c3"], fused["A4"], fused["c4"],
               fused["A5"], fused["c5"])

    in_specs = [pl.BlockSpec((TB, d0p), lambda i: (i, 0))]
    # Constant index_map -> weights stay VMEM-resident across the grid.
    in_specs += [pl.BlockSpec(w.shape, lambda i: (0, 0)) for w in weights]

    out = pl.pallas_call(
        autoencoder_kernel,
        out_shape=jax.ShapeDtypeStruct((N_pad, d3p), jnp.bfloat16),
        grid=(N_pad // TB,),
        in_specs=in_specs,
        out_specs=pl.BlockSpec((TB, d3p), lambda i: (i, 0)),
        compiler_params=pltpu.CompilerParams(
            dimension_semantics=("parallel",),
            vmem_limit_bytes=32 * 1024 * 1024),
    )(x2, *weights)

    y = out[:N, :n_out].astype(jnp.float32).reshape(B, H, 11, W3)
    return jnp.transpose(y, (0, 2, 1, 3))        # (B, 11, H, W3)


# ----------------------------------------------------------------------------
# Deterministic PyTorch-like parameter init.
# ----------------------------------------------------------------------------
def init_raw_params(key):
    specs = [("enc1", 12, 16), ("enc2", 16, 16), ("enc3", 16, 16),
             ("dec1", 16, 16), ("dec2", 16, 16), ("dec3", 16, 16),
             ("dec4", 16, 11)]
    keys = jax.random.split(key, 2 * len(specs))
    raw = {}
    for i, (name, cin, cout) in enumerate(specs):
        bound = 1.0 / np.sqrt(cin * 3)
        raw[name + "_w"] = jax.random.uniform(keys[2 * i], (cout, cin, 1, 3),
                                              jnp.float32, -bound, bound)
        raw[name + "_b"] = jax.random.uniform(keys[2 * i + 1], (cout,),
                                              jnp.float32, -bound, bound)
    return raw


# ----------------------------------------------------------------------------
# Pure numpy op-by-op reference (mirrors the PyTorch module exactly).
# ----------------------------------------------------------------------------
def reference_forward(x, raw):
    def conv(x, w, b):
        Bn, Ci, Hn, Wn = x.shape
        xp = np.pad(x, ((0, 0), (0, 0), (0, 0), (1, 1)))
        y = np.zeros((Bn, w.shape[0], Hn, Wn), np.float64)
        for k in range(3):
            y += np.einsum("bchw,oc->bohw", xp[:, :, :, k:k + Wn], w[:, :, 0, k])
        return y + b[None, :, None, None]

    def maxpool2(x):
        Bn, Cn, Hn, Wn = x.shape
        return x[..., :(Wn // 2) * 2].reshape(Bn, Cn, Hn, Wn // 2, 2).max(-1)

    def upsample2(x):
        Wn = x.shape[-1]
        j = np.arange(2 * Wn)
        src = np.maximum(0.5 * (j + 0.5) - 0.5, 0.0)
        w0 = np.minimum(np.floor(src).astype(int), Wn - 1)
        w1 = np.minimum(w0 + 1, Wn - 1)
        lam = src - w0
        return x[..., w0] * (1.0 - lam) + x[..., w1] * lam

    def avgpool5(x):
        Bn, Cn, Hn, Wn = x.shape
        return x[..., :(Wn // 5) * 5].reshape(Bn, Cn, Hn, Wn // 5, 5).mean(-1)

    relu = lambda v: np.maximum(v, 0.0)
    raw = {k: np.asarray(v, np.float64) for k, v in raw.items()}
    h = np.asarray(x, np.float64)
    # encoder
    h = maxpool2(relu(conv(h, raw["enc1_w"], raw["enc1_b"])))
    h = conv(h, raw["enc2_w"], raw["enc2_b"])
    h = relu(conv(h, raw["enc3_w"], raw["enc3_b"]))
    # decoder
    h = maxpool2(conv(h, raw["dec1_w"], raw["dec1_b"]))
    h = upsample2(conv(h, raw["dec2_w"], raw["dec2_b"]))
    h = relu(maxpool2(conv(h, raw["dec3_w"], raw["dec3_b"])))
    h = avgpool5(conv(h, raw["dec4_w"], raw["dec4_b"]))
    return 1.0 / (1.0 + np.exp(-h))


if __name__ == "__main__":
    B, C, H, W = 2, 12, 1, 40       # shapes implied by the module (in_channel=12)
    key = jax.random.PRNGKey(0)
    kx, kp = jax.random.split(key)

    x = jax.random.normal(kx, (B, C, H, W), jnp.float32)
    raw = init_raw_params(kp)
    fused = build_fused_params(raw, W)          # host precompute, ONCE

    fwd = jax.jit(autoencoder_forward)
    out = jax.block_until_ready(fwd(x, fused))

    ref = reference_forward(np.asarray(x), raw)
    assert out.shape == ref.shape, (out.shape, ref.shape)
    # Tolerance accounts for bf16 weight quantization, bf16 activation casts at
    # every stage, and the bf16 post-sigmoid output store (all well within 2e-2
    # on post-sigmoid values in [0, 1]).
    np.testing.assert_allclose(np.asarray(out), ref, rtol=2e-2, atol=2e-2)

    print("KERNEL_OK")
</pallas_src>

<mosaic_0001>
module attributes {stable_mosaic.version = 11 : i64} {
  func.func @autoencoder_kernel(%arg0: i32, %arg1: memref<16x512xbf16, #tpu.memory_space<vmem>>, %arg2: memref<512x768xbf16, #tpu.memory_space<vmem>>, %arg3: memref<1x768xf32, #tpu.memory_space<vmem>>, %arg4: memref<384x384xbf16, #tpu.memory_space<vmem>>, %arg5: memref<1x384xf32, #tpu.memory_space<vmem>>, %arg6: memref<384x512xbf16, #tpu.memory_space<vmem>>, %arg7: memref<1x512xf32, #tpu.memory_space<vmem>>, %arg8: memref<256x512xbf16, #tpu.memory_space<vmem>>, %arg9: memref<1x512xf32, #tpu.memory_space<vmem>>, %arg10: memref<256x128xbf16, #tpu.memory_space<vmem>>, %arg11: memref<1x128xf32, #tpu.memory_space<vmem>>, %arg12: memref<16x128xbf16, #tpu.memory_space<vmem>>) attributes {dimension_semantics = [#tpu.dimension_semantics<parallel>], iteration_bounds = array<i64: 1>, scalar_prefetch = 0 : i64, scratch_operands = 0 : i64, tpu.core_type = #tpu.core_type<tc>, window_params = [{transform_indices = @transform_0, window_bounds = array<i64: 16, 512>}, {pipeline_mode = #tpu.pipeline_mode<synchronous>, transform_indices = @transform_1, window_bounds = array<i64: 512, 768>}, {pipeline_mode = #tpu.pipeline_mode<synchronous>, transform_indices = @transform_2, window_bounds = array<i64: 1, 768>}, {pipeline_mode = #tpu.pipeline_mode<synchronous>, transform_indices = @transform_3, window_bounds = array<i64: 384, 384>}, {pipeline_mode = #tpu.pipeline_mode<synchronous>, transform_indices = @transform_4, window_bounds = array<i64: 1, 384>}, {pipeline_mode = #tpu.pipeline_mode<synchronous>, transform_indices = @transform_5, window_bounds = array<i64: 384, 512>}, {pipeline_mode = #tpu.pipeline_mode<synchronous>, transform_indices = @transform_6, window_bounds = array<i64: 1, 512>}, {pipeline_mode = #tpu.pipeline_mode<synchronous>, transform_indices = @transform_7, window_bounds = array<i64: 256, 512>}, {pipeline_mode = #tpu.pipeline_mode<synchronous>, transform_indices = @transform_8, window_bounds = array<i64: 1, 512>}, {pipeline_mode = #tpu.pipeline_mode<synchronous>, transform_indices = @transform_9, window_bounds = array<i64: 256, 128>}, {pipeline_mode = #tpu.pipeline_mode<synchronous>, transform_indices = @transform_10, window_bounds = array<i64: 1, 128>}, {transform_indices = @transform_11, window_bounds = array<i64: 16, 128>}]} {
    %c0 = arith.constant 0 : index
    %c0_0 = arith.constant 0 : index
    %0 = vector.load %arg1[%c0, %c0_0] : memref<16x512xbf16, #tpu.memory_space<vmem>>, vector<16x512xbf16>
    %c0_1 = arith.constant 0 : index
    %c0_2 = arith.constant 0 : index
    %1 = vector.load %arg2[%c0_1, %c0_2] : memref<512x768xbf16, #tpu.memory_space<vmem>>, vector<512x768xbf16>
    %cst = arith.constant dense<0.000000e+00> : vector<16x768xf32>
    %2 = tpu.matmul %0, %1, %cst {dimension_numbers = #tpu.dot_dimension_numbers<[1], [0], [0], [1], [0, 0, 1, 1], [], []>} : vector<16x512xbf16>, vector<512x768xbf16>, vector<16x768xf32> -> vector<16x768xf32>
    %c0_3 = arith.constant 0 : index
    %c0_4 = arith.constant 0 : index
    %3 = vector.load %arg3[%c0_3, %c0_4] : memref<1x768xf32, #tpu.memory_space<vmem>>, vector<1x768xf32>
    %4 = vector.broadcast %3 : vector<1x768xf32> to vector<16x768xf32>
    %5 = arith.addf %2, %4 : vector<16x768xf32>
    %6 = vector.extract_strided_slice %5 {offsets = [0, 0], sizes = [16, 384], strides = [1, 1]} : vector<16x768xf32> to vector<16x384xf32>
    %7 = vector.extract_strided_slice %5 {offsets = [0, 384], sizes = [16, 384], strides = [1, 1]} : vector<16x768xf32> to vector<16x384xf32>
    %8 = arith.maximumf %6, %7 : vector<16x384xf32>
    %cst_5 = arith.constant 0.000000e+00 : f32
    %9 = vector.broadcast %cst_5 : f32 to vector<16x384xf32>
    %10 = arith.maximumf %8, %9 : vector<16x384xf32>
    %11 = arith.truncf %10 : vector<16x384xf32> to vector<16x384xbf16>
    %c0_6 = arith.constant 0 : index
    %c0_7 = arith.constant 0 : index
    %12 = vector.load %arg4[%c0_6, %c0_7] : memref<384x384xbf16, #tpu.memory_space<vmem>>, vector<384x384xbf16>
    %cst_8 = arith.constant dense<0.000000e+00> : vector<16x384xf32>
    %13 = tpu.matmul %11, %12, %cst_8 {dimension_numbers = #tpu.dot_dimension_numbers<[1], [0], [0], [1], [0, 0, 1, 1], [], []>} : vector<16x384xbf16>, vector<384x384xbf16>, vector<16x384xf32> -> vector<16x384xf32>
    %c0_9 = arith.constant 0 : index
    %c0_10 = arith.constant 0 : index
    %14 = vector.load %arg5[%c0_9, %c0_10] : memref<1x384xf32, #tpu.memory_space<vmem>>, vector<1x384xf32>
    %15 = vector.broadcast %14 : vector<1x384xf32> to vector<16x384xf32>
    %16 = arith.addf %13, %15 : vector<16x384xf32>
    %cst_11 = arith.constant 0.000000e+00 : f32
    %17 = vector.broadcast %cst_11 : f32 to vector<16x384xf32>
    %18 = arith.maximumf %16, %17 : vector<16x384xf32>
    %19 = arith.truncf %18 : vector<16x384xf32> to vector<16x384xbf16>
    %c0_12 = arith.constant 0 : index
    %c0_13 = arith.constant 0 : index
    %20 = vector.load %arg6[%c0_12, %c0_13] : memref<384x512xbf16, #tpu.memory_space<vmem>>, vector<384x512xbf16>
    %cst_14 = arith.constant dense<0.000000e+00> : vector<16x512xf32>
    %21 = tpu.matmul %19, %20, %cst_14 {dimension_numbers = #tpu.dot_dimension_numbers<[1], [0], [0], [1], [0, 0, 1, 1], [], []>} : vector<16x384xbf16>, vector<384x512xbf16>, vector<16x512xf32> -> vector<16x512xf32>
    %c0_15 = arith.constant 0 : index
    %c0_16 = arith.constant 0 : index
    %22 = vector.load %arg7[%c0_15, %c0_16] : memref<1x512xf32, #tpu.memory_space<vmem>>, vector<1x512xf32>
    %23 = vector.broadcast %22 : vector<1x512xf32> to vector<16x512xf32>
    %24 = arith.addf %21, %23 : vector<16x512xf32>
    %25 = vector.extract_strided_slice %24 {offsets = [0, 0], sizes = [16, 256], strides = [1, 1]} : vector<16x512xf32> to vector<16x256xf32>
    %26 = vector.extract_strided_slice %24 {offsets = [0, 256], sizes = [16, 256], strides = [1, 1]} : vector<16x512xf32> to vector<16x256xf32>
    %27 = arith.maximumf %25, %26 : vector<16x256xf32>
    %28 = arith.truncf %27 : vector<16x256xf32> to vector<16x256xbf16>
    %c0_17 = arith.constant 0 : index
    %c0_18 = arith.constant 0 : index
    %29 = vector.load %arg8[%c0_17, %c0_18] : memref<256x512xbf16, #tpu.memory_space<vmem>>, vector<256x512xbf16>
    %cst_19 = arith.constant dense<0.000000e+00> : vector<16x512xf32>
    %30 = tpu.matmul %28, %29, %cst_19 {dimension_numbers = #tpu.dot_dimension_numbers<[1], [0], [0], [1], [0, 0, 1, 1], [], []>} : vector<16x256xbf16>, vector<256x512xbf16>, vector<16x512xf32> -> vector<16x512xf32>
    %c0_20 = arith.constant 0 : index
    %c0_21 = arith.constant 0 : index
    %31 = vector.load %arg9[%c0_20, %c0_21] : memref<1x512xf32, #tpu.memory_space<vmem>>, vector<1x512xf32>
    %32 = vector.broadcast %31 : vector<1x512xf32> to vector<16x512xf32>
    %33 = arith.addf %30, %32 : vector<16x512xf32>
    %34 = vector.extract_strided_slice %33 {offsets = [0, 0], sizes = [16, 256], strides = [1, 1]} : vector<16x512xf32> to vector<16x256xf32>
    %35 = vector.extract_strided_slice %33 {offsets = [0, 256], sizes = [16, 256], strides = [1, 1]} : vector<16x512xf32> to vector<16x256xf32>
    %36 = arith.maximumf %34, %35 : vector<16x256xf32>
    %cst_22 = arith.constant 0.000000e+00 : f32
    %37 = vector.broadcast %cst_22 : f32 to vector<16x256xf32>
    %38 = arith.maximumf %36, %37 : vector<16x256xf32>
    %39 = arith.truncf %38 : vector<16x256xf32> to vector<16x256xbf16>
    %c0_23 = arith.constant 0 : index
    %c0_24 = arith.constant 0 : index
    %40 = vector.load %arg10[%c0_23, %c0_24] : memref<256x128xbf16, #tpu.memory_space<vmem>>, vector<256x128xbf16>
    %cst_25 = arith.constant dense<0.000000e+00> : vector<16x128xf32>
    %41 = tpu.matmul %39, %40, %cst_25 {dimension_numbers = #tpu.dot_dimension_numbers<[1], [0], [0], [1], [0, 0, 1, 1], [], []>} : vector<16x256xbf16>, vector<256x128xbf16>, vector<16x128xf32> -> vector<16x128xf32>
    %c0_26 = arith.constant 0 : index
    %c0_27 = arith.constant 0 : index
    %42 = vector.load %arg11[%c0_26, %c0_27] : memref<1x128xf32, #tpu.memory_space<vmem>>, vector<1x128xf32>
    %43 = vector.broadcast %42 : vector<1x128xf32> to vector<16x128xf32>
    %44 = arith.addf %41, %43 : vector<16x128xf32>
    %45 = arith.negf %44 : vector<16x128xf32>
    %46 = math.exp %45 : vector<16x128xf32>
    %cst_28 = arith.constant 1.000000e+00 : f32
    %47 = vector.broadcast %cst_28 : f32 to vector<16x128xf32>
    %48 = arith.addf %47, %46 : vector<16x128xf32>
    %49 = arith.divf %47, %48 : vector<16x128xf32>
    %50 = arith.truncf %49 : vector<16x128xf32> to vector<16x128xbf16>
    %c0_29 = arith.constant 0 : index
    %c0_30 = arith.constant 0 : index
    %51 = vector.load %arg12[%c0_29, %c0_30] : memref<16x128xbf16, #tpu.memory_space<vmem>>, vector<16x128xbf16>
    tpu.vector_store %arg12[%c0_29, %c0_30], %50 {strides = array<i32>} : memref<16x128xbf16, #tpu.memory_space<vmem>>, vector<16x128xbf16>,
    return
  }
  func.func @transform_0(%arg0: i32) -> (i32, i32) {
    %c0_i32 = arith.constant 0 : i32
    %c0_i32_0 = arith.constant 0 : i32
    return %arg0, %c0_i32 : i32, i32
  }
  func.func @transform_1(%arg0: i32) -> (i32, i32) {
    %c0_i32 = arith.constant 0 : i32
    %c0_i32_0 = arith.constant 0 : i32
    %c0_i32_1 = arith.constant 0 : i32
    return %c0_i32, %c0_i32_0 : i32, i32
  }
  func.func @transform_2(%arg0: i32) -> (i32, i32) {
    %c0_i32 = arith.constant 0 : i32
    %c0_i32_0 = arith.constant 0 : i32
    %c0_i32_1 = arith.constant 0 : i32
    return %c0_i32, %c0_i32_0 : i32, i32
  }
  func.func @transform_3(%arg0: i32) -> (i32, i32) {
    %c0_i32 = arith.constant 0 : i32
    %c0_i32_0 = arith.constant 0 : i32
    %c0_i32_1 = arith.constant 0 : i32
    return %c0_i32, %c0_i32_0 : i32, i32
  }
  func.func @transform_4(%arg0: i32) -> (i32, i32) {
    %c0_i32 = arith.constant 0 : i32
    %c0_i32_0 = arith.constant 0 : i32
    %c0_i32_1 = arith.constant 0 : i32
    return %c0_i32, %c0_i32_0 : i32, i32
  }
  func.func @transform_5(%arg0: i32) -> (i32, i32) {
    %c0_i32 = arith.constant 0 : i32
    %c0_i32_0 = arith.constant 0 : i32
    %c0_i32_1 = arith.constant 0 : i32
    return %c0_i32, %c0_i32_0 : i32, i32
  }
  func.func @transform_6(%arg0: i32) -> (i32, i32) {
    %c0_i32 = arith.constant 0 : i32
    %c0_i32_0 = arith.constant 0 : i32
    %c0_i32_1 = arith.constant 0 : i32
    return %c0_i32, %c0_i32_0 : i32, i32
  }
  func.func @transform_7(%arg0: i32) -> (i32, i32) {
    %c0_i32 = arith.constant 0 : i32
    %c0_i32_0 = arith.constant 0 : i32
    %c0_i32_1 = arith.constant 0 : i32
    return %c0_i32, %c0_i32_0 : i32, i32
  }
  func.func @transform_8(%arg0: i32) -> (i32, i32) {
    %c0_i32 = arith.constant 0 : i32
    %c0_i32_0 = arith.constant 0 : i32
    %c0_i32_1 = arith.constant 0 : i32
    return %c0_i32, %c0_i32_0 : i32, i32
  }
  func.func @transform_9(%arg0: i32) -> (i32, i32) {
    %c0_i32 = arith.constant 0 : i32
    %c0_i32_0 = arith.constant 0 : i32
    %c0_i32_1 = arith.constant 0 : i32
    return %c0_i32, %c0_i32_0 : i32, i32
  }
  func.func @transform_10(%arg0: i32) -> (i32, i32) {
    %c0_i32 = arith.constant 0 : i32
    %c0_i32_0 = arith.constant 0 : i32
    %c0_i32_1 = arith.constant 0 : i32
    return %c0_i32, %c0_i32_0 : i32, i32
  }
  func.func @transform_11(%arg0: i32) -> (i32, i32) {
    %c0_i32 = arith.constant 0 : i32
    %c0_i32_0 = arith.constant 0 : i32
    return %arg0, %c0_i32 : i32, i32
  }
}

</mosaic_0001>

<bundles_post_ra>
// kernel: autoencoder_forward.1
= control target key start
LH: loop header
LB: loop body
LE: loop exit
PB: predicated region body
PF: predicated region fallthrough
CT: control target
= control target key end

     0   :  { %16 = vsyncpa [#allocation3], 0  ;;  %s5354_s0 = inlined_call_operand.vmem [shape: bf16[16,512], index: 0, kind: input, shape index: {}]   ;;  %s5355_s1 = inlined_call_operand.hbm [shape: bf16[512,768], index: 1, kind: input, shape index: {}]   ;;  %s5356_s2 = inlined_call_operand.vmem [shape: f32[1,768], index: 2, kind: input, shape index: {}]   ;;  %s5357_s3 = inlined_call_operand.hbm [shape: bf16[384,384], index: 3, kind: input, shape index: {}]   ;;  %s5358_s4 = inlined_call_operand.vmem [shape: f32[1,384], index: 4, kind: input, shape index: {}]   ;;  %s5359_s5 = inlined_call_operand.hbm [shape: bf16[384,512], index: 5, kind: input, shape index: {}]   ;;  %s5360_s6 = inlined_call_operand.vmem [shape: f32[1,512], index: 6, kind: input, shape index: {}]   ;;  %s5361_s7 = inlined_call_operand.hbm [shape: bf16[256,512], index: 7, kind: input, shape index: {}]   ;;  %s5362_s8 = inlined_call_operand.vmem [shape: f32[1,512], index: 8, kind: input, shape index: {}]   ;;  %s5363_s9 = inlined_call_operand.hbm [shape: bf16[256,128], index: 9, kind: input, shape index: {}]   ;;  %s5364_s10 = inlined_call_operand.vmem [shape: f32[1,128], index: 10, kind: input, shape index: {}]   ;;  %s5365_s11 = inlined_call_operand.vmem [shape: bf16[16,128], index: 11, kind: output, shape index: {}]  }
   0x1   :  { %17 = vsyncpa [#allocation5], 0 }
   0x2   :  { %18 = vsyncpa [#allocation8], 0  ;;  %s5108_s17 = smov [#allocation4]   ;;  %s4992_s21 = scalar_lea.hbm %s5357_s3, 9216 }
   0x3   :  { %s40_s18 = sshll.u32 %s5108_s17, 4  ;;  %p4993_p0 = scmp.ne.s32.totalorder %s5357_s3, %s4992_s21  ;;  %s41_s18 = int_to_ptr.vmem [resolvable:$true] %s40_s18 }
   0x4   :  { %p4996_p1 = scmp.lt.u32.totalorder %s4992_s21, %s5357_s3 }
   0x6   :  { %p4998_p2 = pnand %p4996_p1, %p4993_p0 }
   0x8   :  { %5001 = shalt.err (!%p4998_p2)
}
   0x9   :  { %s5002_s26 = scalar_lea.vmem %s41_s18, 9216  ;;  %p5007_p4 = scmp.lt.s32.totalorder %s41_s18, %s41_s18 }
   0xa   :  { %p5003_p3 = scmp.ne.s32.totalorder %s41_s18, %s5002_s26  ;;  %p5008_p5 = scmp.lt.s32.totalorder %s5002_s26, %s5002_s26 }
   0xc   :  { %p5009_p6 = por %p5008_p5, %p5007_p4 }
   0xe   :  { %p5010_p7 = pnand %p5009_p6, %p5003_p3 }
  0x10   :  { %5013 = shalt.err (!%p5010_p7)
}
  0x11   :  { %s5109_s27 = smov 192   ;;  %s5110_s28 = smov 12  }
  0x12   :  { %46 = dma.hbm_to_vmem [thread:$0]  %s5357_s3, 9216, %s41_s18, [#allocation5], %s5109_s27, %s5109_s27, %s5110_s28  }
  0x13   :  { %s5111_s12 = smov [#allocation7]   ;;  %s5112_s14 = smov [#allocation2]  }
  0x14   :  { %s68_s13 = sshll.u32 %s5111_s12, 4  ;;  %s26_s15 = sshll.u32 %s5112_s14, 4  ;;  %s69_s13 = int_to_ptr.vmem [resolvable:$true] %s68_s13  ;;  %s27_s15 = int_to_ptr.vmem [resolvable:$true] %s26_s15 }
  0x15   :  { %s5014_s19 = scalar_lea.hbm %s5361_s7, 8192 }
  0x16   :  { %p5015_p8 = scmp.ne.s32.totalorder %s5361_s7, %s5014_s19  ;;  %p5018_p9 = scmp.lt.u32.totalorder %s5014_s19, %s5361_s7 }
  0x18   :  { %p5020_p10 = pnand %p5018_p9, %p5015_p8 }
  0x1a   :  { %5023 = shalt.err (!%p5020_p10)
}
  0x1b   :  { %s5024_s3 = scalar_lea.vmem %s69_s13, 8192  ;;  %p5029_p12 = scmp.lt.s32.totalorder %s69_s13, %s69_s13 }
  0x1c   :  { %p5025_p11 = scmp.ne.s32.totalorder %s69_s13, %s5024_s3  ;;  %p5030_p13 = scmp.lt.s32.totalorder %s5024_s3, %s5024_s3 }
  0x1e   :  { %p5031_p0 = por %p5030_p13, %p5029_p12 }
  0x20   :  { %p5032_p1 = pnand %p5031_p0, %p5025_p11 }
  0x22   :  { %5035 = shalt.err (!%p5032_p1)
}
  0x23   :  { %s5113_s18 = smov 256   ;;  %s5114_s24 = smov 16  }
  0x24   :  { %74 = dma.hbm_to_vmem [thread:$0]  %s5361_s7, 8192, %s69_s13, [#allocation8], %s5113_s18, %s5113_s18, %s5114_s24  }
  0x25   :  { %s5036_s29 = scalar_lea.hbm %s5355_s1, 24576 }
  0x26   :  { %p5037_p2 = scmp.ne.s32.totalorder %s5355_s1, %s5036_s29  ;;  %p5040_p3 = scmp.lt.u32.totalorder %s5036_s29, %s5355_s1 }
  0x28   :  { %p5042_p4 = pnand %p5040_p3, %p5037_p2 }
  0x2a   :  { %5045 = shalt.err (!%p5042_p4)
}
  0x2b   :  { %s5046_s17 = scalar_lea.vmem %s27_s15, 24576  ;;  %p5051_p6 = scmp.lt.s32.totalorder %s27_s15, %s27_s15 }
  0x2c   :  { %p5047_p5 = scmp.ne.s32.totalorder %s27_s15, %s5046_s17  ;;  %p5052_p7 = scmp.lt.s32.totalorder %s5046_s17, %s5046_s17 }
  0x2e   :  { %p5053_p8 = por %p5052_p7, %p5051_p6 }
  0x30   :  { %p5054_p9 = pnand %p5053_p8, %p5047_p5 }
  0x32   :  { %5057 = shalt.err (!%p5054_p9)
}
  0x33   :  { %s5115_s7 = smov 384   ;;  %s5116_s13 = smov 24  }
  0x34   :  { %32 = dma.hbm_to_vmem [thread:$0]  %s5355_s1, 24576, %s27_s15, [#allocation3], %s5115_s7, %s5115_s7, %s5116_s13  }
  0x35   :  { %s5117_s21 = smov [#allocation6]   ;;  %s5118_s23 = smov [#allocation9]  }
  0x36   :  { %s54_s22 = sshll.u32 %s5117_s21, 4  ;;  %s82_s3 = sshll.u32 %s5118_s23, 4  ;;  %s55_s22 = int_to_ptr.vmem [resolvable:$true] %s54_s22  ;;  %s83_s3 = int_to_ptr.vmem [resolvable:$true] %s82_s3 }
  0x37   :  { %s5058_s27 = scalar_lea.hbm %s5359_s5, 12288 }
  0x38   :  { %p5059_p10 = scmp.ne.s32.totalorder %s5359_s5, %s5058_s27  ;;  %p5062_p11 = scmp.lt.u32.totalorder %s5058_s27, %s5359_s5 }
  0x3a   :  { %p5064_p12 = pnand %p5062_p11, %p5059_p10 }
  0x3c   :  { %5067 = shalt.err (!%p5064_p12)
}
  0x3d   :  { %s5068_s1 = scalar_lea.vmem %s55_s22, 12288  ;;  %p5073_p0 = scmp.lt.s32.totalorder %s55_s22, %s55_s22 }
  0x3e   :  { %p5069_p13 = scmp.ne.s32.totalorder %s55_s22, %s5068_s1  ;;  %p5074_p1 = scmp.lt.s32.totalorder %s5068_s1, %s5068_s1 }
  0x40   :  { %p5075_p2 = por %p5074_p1, %p5073_p0 }
  0x42   :  { %p5076_p3 = pnand %p5075_p2, %p5069_p13 }
  0x44   :  { %5079 = shalt.err (!%p5076_p3)
}
  0x45   :  { %60 = dma.hbm_to_vmem [thread:$0]  %s5359_s5, 12288, %s55_s22, [#allocation5], %s5113_s18, %s5113_s18, %s5114_s24  }
  0x46   :  { %s5080_s7 = scalar_lea.hbm %s5363_s9, 2048 }
  0x47   :  { %p5081_p4 = scmp.ne.s32.totalorder %s5363_s9, %s5080_s7  ;;  %p5084_p5 = scmp.lt.u32.totalorder %s5080_s7, %s5363_s9 }
  0x49   :  { %p5086_p6 = pnand %p5084_p5, %p5081_p4 }
  0x4b   :  { %5089 = shalt.err (!%p5086_p6)
}
  0x4c   :  { %s5090_s23 = scalar_lea.vmem %s83_s3, 2048  ;;  %p5095_p8 = scmp.lt.s32.totalorder %s83_s3, %s83_s3 }
  0x4d   :  { %p5091_p7 = scmp.ne.s32.totalorder %s83_s3, %s5090_s23  ;;  %p5096_p9 = scmp.lt.s32.totalorder %s5090_s23, %s5090_s23 }
  0x4f   :  { %p5097_p10 = por %p5096_p9, %p5095_p8 }
  0x51   :  { %p5098_p11 = pnand %p5097_p10, %p5091_p7 }
  0x53   :  { %5101 = shalt.err (!%p5098_p11)
}
  0x54   :  { %s5119_s5 = smov 64   ;;  %s5120_s18 = smov 4  }
  0x55   :  { %88 = dma.hbm_to_vmem [thread:$0]  %s5363_s9, 2048, %s83_s3, [#allocation8], %s5119_s5, %s5119_s5, %s5120_s18  }
  0x56   :  { %5102 = dma.done.wait [#allocation3], 24576  }
  0x57   :  { %5103 = vsyncadd [#allocation3], 4294942720 }
  0x58   :  { %5104 = dma.done.wait [#allocation5], 21504  }
  0x59   :  { %5105 = vsyncadd [#allocation5], 4294945792 }
  0x5a   :  { %5106 = dma.done.wait [#allocation8], 10240  }
  0x5b   :  { %5107 = vsyncadd [#allocation8], 4294957056  ;;  %v4338_v0 = vld [vmem:[#allocation2 + $0x4] ss:$24 sps:$4 sm:$0xff]   ;;  %v4342_v2 = vld [vmem:[#allocation2] ss:$24 sps:$4 sm:$0xff]  }
  0x5c   :  { %v4340_v1 = vld [vmem:[#allocation2 + $0xc] ss:$24 sps:$4 sm:$0xff]   ;;  %1315 = vmatprep.subr.bf16.mxu0 %v4338_v0  ;;  %v4343_v3 = vld [vmem:[#allocation2 + $0x8] ss:$24 sps:$4 sm:$0xff]   ;;  %v4346_v5 = vld [vmem:[#allocation2 + $0x3c] ss:$24 sps:$4 sm:$0xff]  }
  0x5d   :  { %1401 = vmatprep.subr.bf16.mxu1 %v4340_v1  ;;  %v4344_v4 = vld [vmem:[#allocation2 + $0x34] ss:$24 sps:$4 sm:$0xff]   ;;  %1316 = vmatpush1.bf16.msra.mxu0 %v4342_v2  ;;  %v4348_v6 = vld [vmem:[#allocation2 + $0x30] ss:$24 sps:$4 sm:$0xff]   ;;  %v4350_v8 = vld [vmem:[#allocation2 + $0x64] ss:$24 sps:$4 sm:$0xff]  }
  0x5e   :  { %1402 = vmatpush1.bf16.msra.mxu1 %v4343_v3  ;;  %1317 = vmatprep.subr.bf16.mxu0 %v4344_v4  ;;  %v4349_v7 = vld [vmem:[#allocation2 + $0x38] ss:$24 sps:$4 sm:$0xff]   ;;  %v4352_v9 = vld [vmem:[#allocation2 + $0x6c] ss:$24 sps:$4 sm:$0xff]   ;;  %v4355_v11 = vld [vmem:[#allocation2 + $0x68] ss:$24 sps:$4 sm:$0xff]  }
  0x5f   :  { %1403 = vmatprep.subr.bf16.mxu1 %v4346_v5  ;;  %v4354_v10 = vld [vmem:[#allocation2 + $0x60] ss:$24 sps:$4 sm:$0xff]   ;;  %v4356_v12 = vld [vmem:[#allocation2 + $0x94] ss:$24 sps:$4 sm:$0xff]   ;;  %v4360_v14 = vld [vmem:[#allocation2 + $0x90] ss:$24 sps:$4 sm:$0xff]  }
  0x60   :  { %v4358_v13 = vld [vmem:[#allocation2 + $0x9c] ss:$24 sps:$4 sm:$0xff]   ;;  %v4361_v15 = vld [vmem:[#allocation2 + $0x98] ss:$24 sps:$4 sm:$0xff]   ;;  %v4364_v17 = vld [vmem:[#allocation2 + $0xcc] ss:$24 sps:$4 sm:$0xff]  }
  0x61   :  { %1318 = vmatpush1.bf16.msra.mxu0 %v4348_v6  ;;  %v4362_v16 = vld [vmem:[#allocation2 + $0xc4] ss:$24 sps:$4 sm:$0xff]   ;;  %v4366_v18 = vld [vmem:[#allocation2 + $0xc0] ss:$24 sps:$4 sm:$0xff]   ;;  %v4368_v20 = vld [vmem:[#allocation2 + $0xf4] ss:$24 sps:$4 sm:$0xff]  }
  0x62   :  { %1404 = vmatpush1.bf16.msra.mxu1 %v4349_v7  ;;  %1319 = vmatprep.subr.bf16.mxu0 %v4350_v8  ;;  %v4367_v19 = vld [vmem:[#allocation2 + $0xc8] ss:$24 sps:$4 sm:$0xff]   ;;  %v4370_v21 = vld [vmem:[#allocation2 + $0xfc] ss:$24 sps:$4 sm:$0xff]   ;;  %v4373_v23 = vld [vmem:[#allocation2 + $0xf8] ss:$24 sps:$4 sm:$0xff]  }
  0x63   :  { %1405 = vmatprep.subr.bf16.mxu1 %v4352_v9  ;;  %v4372_v22 = vld [vmem:[#allocation2 + $0xf0] ss:$24 sps:$4 sm:$0xff]   ;;  %v4374_v24 = vld [vmem:[#allocation2 + $0x124] ss:$24 sps:$4 sm:$0xff]   ;;  %v4378_v26 = vld [vmem:[#allocation2 + $0x120] ss:$24 sps:$4 sm:$0xff]  }
  0x64   :  { %v4376_v25 = vld [vmem:[#allocation2 + $0x12c] ss:$24 sps:$4 sm:$0xff]   ;;  %v4379_v27 = vld [vmem:[#allocation2 + $0x128] ss:$24 sps:$4 sm:$0xff]   ;;  %v4382_v29 = vld [vmem:[#allocation2 + $0x15c] ss:$24 sps:$4 sm:$0xff]  }
  0x65   :  { %1320 = vmatpush1.bf16.msra.mxu0 %v4354_v10  ;;  %v4380_v28 = vld [vmem:[#allocation2 + $0x154] ss:$24 sps:$4 sm:$0xff]   ;;  %v4384_v30 = vld [vmem:[#allocation2 + $0x150] ss:$24 sps:$4 sm:$0xff]   ;;  %v4386_v32 = vld [vmem:[#allocation2 + $0x184] ss:$24 sps:$4 sm:$0xff]  }
  0x66   :  { %1406 = vmatpush1.bf16.msra.mxu1 %v4355_v11  ;;  %1321 = vmatprep.subr.bf16.mxu0 %v4356_v12  ;;  %v4385_v31 = vld [vmem:[#allocation2 + $0x158] ss:$24 sps:$4 sm:$0xff]   ;;  %v4388_v33 = vld [vmem:[#allocation2 + $0x18c] ss:$24 sps:$4 sm:$0xff]   ;;  %v4391_v35 = vld [vmem:[#allocation2 + $0x188] ss:$24 sps:$4 sm:$0xff]  }
  0x67   :  { %1407 = vmatprep.subr.bf16.mxu1 %v4358_v13  ;;  %v4390_v34 = vld [vmem:[#allocation2 + $0x180] ss:$24 sps:$4 sm:$0xff]   ;;  %v4392_v36 = vld [vmem:[#allocation2 + $0x1b4] ss:$24 sps:$4 sm:$0xff]   ;;  %v4396_v38 = vld [vmem:[#allocation2 + $0x1b0] ss:$24 sps:$4 sm:$0xff]  }
  0x68   :  { %v4394_v37 = vld [vmem:[#allocation2 + $0x1bc] ss:$24 sps:$4 sm:$0xff]   ;;  %v4397_v39 = vld [vmem:[#allocation2 + $0x1b8] ss:$24 sps:$4 sm:$0xff]   ;;  %v4400_v41 = vld [vmem:[#allocation2 + $0x1ec] ss:$24 sps:$4 sm:$0xff]  }
  0x69   :  { %1322 = vmatpush1.bf16.msra.mxu0 %v4360_v14  ;;  %v4398_v40 = vld [vmem:[#allocation2 + $0x1e4] ss:$24 sps:$4 sm:$0xff]   ;;  %v4402_v42 = vld [vmem:[#allocation2 + $0x1e0] ss:$24 sps:$4 sm:$0xff]   ;;  %v4404_v44 = vld [vmem:[#allocation2 + $0x214] ss:$24 sps:$4 sm:$0xff]  }
  0x6a   :  { %1408 = vmatpush1.bf16.msra.mxu1 %v4361_v15  ;;  %1323 = vmatprep.subr.bf16.mxu0 %v4362_v16  ;;  %v4403_v43 = vld [vmem:[#allocation2 + $0x1e8] ss:$24 sps:$4 sm:$0xff]   ;;  %v4406_v45 = vld [vmem:[#allocation2 + $0x21c] ss:$24 sps:$4 sm:$0xff]   ;;  %v4409_v48 = vld [vmem:[#allocation2 + $0x218] ss:$24 sps:$4 sm:$0xff]  }
  0x6b   :  { %1409 = vmatprep.subr.bf16.mxu1 %v4364_v17  ;;  %v4408_v46 = vld [vmem:[#allocation2 + $0x210] ss:$24 sps:$4 sm:$0xff]   ;;  %v5253_v47 = vld [vmem:[%s5354_s0 + $0x4] ss:$16 sps:$4 sm:$0xff]   ;;  %v4414_v51 = vld [vmem:[#allocation2 + $0x240] ss:$24 sps:$4 sm:$0xff]  }
  0x6c   :  { %v4410_v49 = vld [vmem:[#allocation2 + $0x244] ss:$24 sps:$4 sm:$0xff]   ;;  %1347 = vmatprep.mubr.bf16.mxu0 %v5253_v47  ;;  %1433 = vmatprep.mubr.bf16.mxu1 %v5253_v47  ;;  %v4415_v52 = vld [vmem:[#allocation2 + $0x248] ss:$24 sps:$4 sm:$0xff]   ;;  %v4416_v53 = vld [vmem:[#allocation2 + $0x274] ss:$24 sps:$4 sm:$0xff]  }
  0x6d   :  { %1324 = vmatpush1.bf16.msra.mxu0 %v4366_v18  ;;  %v4412_v50 = vld [vmem:[#allocation2 + $0x24c] ss:$24 sps:$4 sm:$0xff]   ;;  %v4418_v54 = vld [vmem:[#allocation2 + $0x27c] ss:$24 sps:$4 sm:$0xff]   ;;  %v4420_v55 = vld [vmem:[#allocation2 + $0x270] ss:$24 sps:$4 sm:$0xff]  }
  0x6e   :  { %1410 = vmatpush1.bf16.msra.mxu1 %v4367_v19  ;;  %1325 = vmatprep.subr.bf16.mxu0 %v4368_v20  ;;  %v4421_v56 = vld [vmem:[#allocation2 + $0x278] ss:$24 sps:$4 sm:$0xff]   ;;  %v4422_v57 = vld [vmem:[#allocation2 + $0x2a4] ss:$24 sps:$4 sm:$0xff]   ;;  %v4427_v60 = vld [vmem:[#allocation2 + $0x2a8] ss:$24 sps:$4 sm:$0xff]  }
  0x6f   :  { %1411 = vmatprep.subr.bf16.mxu1 %v4370_v21  ;;  %v4424_v58 = vld [vmem:[#allocation2 + $0x2ac] ss:$24 sps:$4 sm:$0xff]   ;;  %v4426_v59 = vld [vmem:[#allocation2 + $0x2a0] ss:$24 sps:$4 sm:$0xff]   ;;  %v4430_v62 = vld [vmem:[#allocation2 + $0x2dc] ss:$24 sps:$4 sm:$0xff]  }
  0x70   :  { %v4428_v61 = vld [vmem:[#allocation2 + $0x2d4] ss:$24 sps:$4 sm:$0xff]   ;;  %v4432_v63 = vld [vmem:[#allocation2 + $0x2d0] ss:$24 sps:$4 sm:$0xff]   ;;  %v4438_v1 = vld [vmem:[#allocation2 + $0x304] ss:$24 sps:$4 sm:$0xff]  }
  0x71   :  { %1326 = vmatpush1.bf16.msra.mxu0 %v4372_v22  ;;  %v4433_v0 = vld [vmem:[#allocation2 + $0x2d8] ss:$24 sps:$4 sm:$0xff]   ;;  %v4441_v2 = vld [vmem:[#allocation2 + $0x30c] ss:$24 sps:$4 sm:$0xff]   ;;  %v4439_v4 = vld [vmem:[#allocation2 + $0x308] ss:$24 sps:$4 sm:$0xff]  }
  0x72   :  { %1412 = vmatpush1.bf16.msra.mxu1 %v4373_v23  ;;  %1327 = vmatprep.subr.bf16.mxu0 %v4374_v24  ;;  %v4436_v3 = vld [vmem:[#allocation2 + $0x300] ss:$24 sps:$4 sm:$0xff]   ;;  %v4445_v6 = vld [vmem:[#allocation2 + $0x334] ss:$24 sps:$4 sm:$0xff]   ;;  %v4443_v8 = vld [vmem:[#allocation2 + $0x330] ss:$24 sps:$4 sm:$0xff]  }
  0x73   :  { %1413 = vmatprep.subr.bf16.mxu1 %v4376_v25  ;;  %v5260_v5 = vld [vmem:[%s5354_s0] ss:$16 sps:$4 sm:$0xff]   ;;  %v4448_v7 = vld [vmem:[#allocation2 + $0x33c] ss:$24 sps:$4 sm:$0xff]   ;;  %v4454_v11 = vld [vmem:[#allocation2 + $0x36c] ss:$24 sps:$4 sm:$0xff]  }
  0x74   :  { %v4446_v9 = vld [vmem:[#allocation2 + $0x338] ss:$24 sps:$4 sm:$0xff]   ;;  %v4451_v10 = vld [vmem:[#allocation2 + $0x364] ss:$24 sps:$4 sm:$0xff]   ;;  %v4452_v13 = vld [vmem:[#allocation2 + $0x368] ss:$24 sps:$4 sm:$0xff]  }
  0x75   :  { %1328 = vmatpush1.bf16.msra.mxu0 %v4378_v26  ;;  %v4449_v12 = vld [vmem:[#allocation2 + $0x360] ss:$24 sps:$4 sm:$0xff]   ;;  %v4457_v14 = vld [vmem:[#allocation2 + $0x394] ss:$24 sps:$4 sm:$0xff]   ;;  %v4455_v16 = vld [vmem:[#allocation2 + $0x390] ss:$24 sps:$4 sm:$0xff]  }
  0x76   :  { %1414 = vmatpush1.bf16.msra.mxu1 %v4379_v27  ;;  %1329 = vmatprep.subr.bf16.mxu0 %v4380_v28  ;;  %v4460_v15 = vld [vmem:[#allocation2 + $0x39c] ss:$24 sps:$4 sm:$0xff]   ;;  %v4458_v17 = vld [vmem:[#allocation2 + $0x398] ss:$24 sps:$4 sm:$0xff]   ;;  %v4466_v19 = vld [vmem:[#allocation2 + $0x3cc] ss:$24 sps:$4 sm:$0xff]  }
  0x77   :  { %1415 = vmatprep.subr.bf16.mxu1 %v4382_v29  ;;  %v4463_v18 = vld [vmem:[#allocation2 + $0x3c4] ss:$24 sps:$4 sm:$0xff]   ;;  %v4461_v20 = vld [vmem:[#allocation2 + $0x3c0] ss:$24 sps:$4 sm:$0xff]   ;;  %v4469_v22 = vld [vmem:[#allocation2 + $0x3f4] ss:$24 sps:$4 sm:$0xff]  }
  0x78   :  { %v4464_v21 = vld [vmem:[#allocation2 + $0x3c8] ss:$24 sps:$4 sm:$0xff]   ;;  %v4472_v23 = vld [vmem:[#allocation2 + $0x3fc] ss:$24 sps:$4 sm:$0xff]   ;;  %v4470_v25 = vld [vmem:[#allocation2 + $0x3f8] ss:$24 sps:$4 sm:$0xff]  }
  0x79   :  { %1330 = vmatpush1.bf16.msra.mxu0 %v4384_v30  ;;  %v4467_v24 = vld [vmem:[#allocation2 + $0x3f0] ss:$24 sps:$4 sm:$0xff]   ;;  %v4475_v26 = vld [vmem:[#allocation2 + $0x424] ss:$24 sps:$4 sm:$0xff]   ;;  %v4473_v28 = vld [vmem:[#allocation2 + $0x420] ss:$24 sps:$4 sm:$0xff]  }
  0x7a   :  { %1416 = vmatpush1.bf16.msra.mxu1 %v4385_v31  ;;  %1331 = vmatprep.subr.bf16.mxu0 %v4386_v32  ;;  %v4478_v27 = vld [vmem:[#allocation2 + $0x42c] ss:$24 sps:$4 sm:$0xff]   ;;  %v4476_v29 = vld [vmem:[#allocation2 + $0x428] ss:$24 sps:$4 sm:$0xff]   ;;  %v4484_v32 = vld [vmem:[#allocation2 + $0x45c] ss:$24 sps:$4 sm:$0xff]  }
  0x7b   :  { %1417 = vmatprep.subr.bf16.mxu1 %v4388_v33  ;;  %v5267_v30 = vld [vmem:[%s5354_s0 + $0xc] ss:$16 sps:$4 sm:$0xff]   ;;  %v4479_v33 = vld [vmem:[#allocation2 + $0x450] ss:$24 sps:$4 sm:$0xff]   ;;  %vm5122_vm0 = vmmov 0  }
  0x7c   :  { %v4481_v31 = vld [vmem:[#allocation2 + $0x454] ss:$24 sps:$4 sm:$0xff]  }
  0x7d   :  { %1332 = vmatpush1.bf16.msra.mxu0 %v4390_v34  ;;  %v4482_v34 = vld [vmem:[#allocation2 + $0x458] ss:$24 sps:$4 sm:$0xff]  }
  0x7e   :  { %1418 = vmatpush1.bf16.msra.mxu1 %v4391_v35  ;;  %1333 = vmatprep.subr.bf16.mxu0 %v4392_v36  ;;  %v4487_v35 = vld [vmem:[#allocation2 + $0x484] ss:$24 sps:$4 sm:$0xff]  }
  0x7f   :  { %1419 = vmatprep.subr.bf16.mxu1 %v4394_v37  ;;  %v4490_v36 = vld [vmem:[#allocation2 + $0x48c] ss:$24 sps:$4 sm:$0xff]   ;;  %v4485_v37 = vld [vmem:[#allocation2 + $0x480] ss:$24 sps:$4 sm:$0xff]  }
  0x81   :  { %1334 = vmatpush1.bf16.msra.mxu0 %v4396_v38  ;;  %v4488_v38 = vld [vmem:[#allocation2 + $0x488] ss:$24 sps:$4 sm:$0xff]  }
  0x82   :  { %1420 = vmatpush1.bf16.msra.mxu1 %v4397_v39  ;;  %1335 = vmatprep.subr.bf16.mxu0 %v4398_v40  ;;  %v4493_v39 = vld [vmem:[#allocation2 + $0x4b4] ss:$24 sps:$4 sm:$0xff]  }
  0x83   :  { %1421 = vmatprep.subr.bf16.mxu1 %v4400_v41  ;;  %v4496_v40 = vld [vmem:[#allocation2 + $0x4bc] ss:$24 sps:$4 sm:$0xff]   ;;  %v4491_v41 = vld [vmem:[#allocation2 + $0x4b0] ss:$24 sps:$4 sm:$0xff]  }
  0x85   :  { %1336 = vmatpush1.bf16.msra.mxu0 %v4402_v42  ;;  %v4494_v42 = vld [vmem:[#allocation2 + $0x4b8] ss:$24 sps:$4 sm:$0xff]  }
  0x86   :  { %1422 = vmatpush1.bf16.msra.mxu1 %v4403_v43  ;;  %1337 = vmatprep.subr.bf16.mxu0 %v4404_v44  ;;  %v4499_v43 = vld [vmem:[#allocation2 + $0x4e4] ss:$24 sps:$4 sm:$0xff]  }
  0x87   :  { %1423 = vmatprep.subr.bf16.mxu1 %v4406_v45  ;;  %v4502_v44 = vld [vmem:[#allocation2 + $0x4ec] ss:$24 sps:$4 sm:$0xff]   ;;  %v4497_v45 = vld [vmem:[#allocation2 + $0x4e0] ss:$24 sps:$4 sm:$0xff]  }
  0x89   :  { %1338 = vmatpush1.bf16.msra.mxu0 %v4408_v46  ;;  %v4500_v46 = vld [vmem:[#allocation2 + $0x4e8] ss:$24 sps:$4 sm:$0xff]  }
  0x8a   :  { %1424 = vmatpush1.bf16.msra.mxu1 %v4409_v48  ;;  %1339 = vmatprep.subr.bf16.mxu0 %v4410_v49  ;;  %v4505_v48 = vld [vmem:[#allocation2 + $0x514] ss:$24 sps:$4 sm:$0xff]  }
  0x8b   :  { %1425 = vmatprep.subr.bf16.mxu1 %v4412_v50  ;;  %v4508_v49 = vld [vmem:[#allocation2 + $0x51c] ss:$24 sps:$4 sm:$0xff]   ;;  %v4503_v50 = vld [vmem:[#allocation2 + $0x510] ss:$24 sps:$4 sm:$0xff]  }
  0x8d   :  { %1340 = vmatpush1.bf16.msra.mxu0 %v4414_v51  ;;  %v4506_v51 = vld [vmem:[#allocation2 + $0x518] ss:$24 sps:$4 sm:$0xff]  }
  0x8e   :  { %1426 = vmatpush1.bf16.msra.mxu1 %v4415_v52  ;;  %1341 = vmatprep.subr.bf16.mxu0 %v4416_v53  ;;  %v4511_v52 = vld [vmem:[#allocation2 + $0x544] ss:$24 sps:$4 sm:$0xff]  }
  0x8f   :  { %1427 = vmatprep.subr.bf16.mxu1 %v4418_v54  ;;  %v4514_v53 = vld [vmem:[#allocation2 + $0x54c] ss:$24 sps:$4 sm:$0xff]   ;;  %v4509_v54 = vld [vmem:[#allocation2 + $0x540] ss:$24 sps:$4 sm:$0xff]  }
  0x91   :  { %1342 = vmatpush1.bf16.msra.mxu0 %v4420_v55  ;;  %v4512_v55 = vld [vmem:[#allocation2 + $0x548] ss:$24 sps:$4 sm:$0xff]  }
  0x92   :  { %1428 = vmatpush1.bf16.msra.mxu1 %v4421_v56  ;;  %1343 = vmatprep.subr.bf16.mxu0 %v4422_v57  ;;  %v4517_v56 = vld [vmem:[#allocation2 + $0x574] ss:$24 sps:$4 sm:$0xff]  }
  0x93   :  { %1429 = vmatprep.subr.bf16.mxu1 %v4424_v58  ;;  %v4520_v57 = vld [vmem:[#allocation2 + $0x57c] ss:$24 sps:$4 sm:$0xff]   ;;  %v4515_v58 = vld [vmem:[#allocation2 + $0x570] ss:$24 sps:$4 sm:$0xff]  }
  0x95   :  { %1344 = vmatpush1.bf16.msra.mxu0 %v4426_v59  ;;  %v4518_v59 = vld [vmem:[#allocation2 + $0x578] ss:$24 sps:$4 sm:$0xff]  }
  0x96   :  { %1430 = vmatpush1.bf16.msra.mxu1 %v4427_v60  ;;  %1345 = vmatprep.subr.bf16.mxu0 %v4428_v61  ;;  %v4523_v60 = vld [vmem:[#allocation2 + $0x5a4] ss:$24 sps:$4 sm:$0xff]  }
  0x97   :  { %1431 = vmatprep.subr.bf16.mxu1 %v4430_v62  ;;  %v4526_v61 = vld [vmem:[#allocation2 + $0x5ac] ss:$24 sps:$4 sm:$0xff]   ;;  %v4521_v62 = vld [vmem:[#allocation2 + $0x5a0] ss:$24 sps:$4 sm:$0xff]  }
  0x99   :  { %1346 = vmatpush1.bf16.msra.mxu0 %v4432_v63  ;;  %v4524_v63 = vld [vmem:[#allocation2 + $0x5a8] ss:$24 sps:$4 sm:$0xff]  }
  0x9a   :  { %1432 = vmatpush1.bf16.msra.mxu1 %v4433_v0  ;;  %1358 = vmatprep.subr.bf16.mxu0 %v4438_v1  ;;  %v4529_v0 = vld [vmem:[#allocation2 + $0x5d4] ss:$24 sps:$4 sm:$0xff]  }
  0x9b   :  { %1444 = vmatprep.subr.bf16.mxu1 %v4441_v2  ;;  %v4532_v1 = vld [vmem:[#allocation2 + $0x5dc] ss:$24 sps:$4 sm:$0xff]   ;;  %v4527_v2 = vld [vmem:[#allocation2 + $0x5d0] ss:$24 sps:$4 sm:$0xff]  }
  0x9c   :  { %1348 = vmatmul.mubr.bf16.vlgmr.msra.gmra.mrb[0].mxu0 %v5260_v5 }
  0x9d   :  { %1434 = vmatmul.mubr.bf16.vlgmr.msra.gmra.mrb[0].mxu1 %v5260_v5  ;;  %1359 = vmatpush1.bf16.msra.mxu0 %v4436_v3  ;;  %v4530_v3 = vld [vmem:[#allocation2 + $0x5d8] ss:$24 sps:$4 sm:$0xff]  }
  0x9e   :  { %1445 = vmatpush1.bf16.msra.mxu1 %v4439_v4  ;;  %1360 = vmatprep.subr.bf16.mxu0 %v4445_v6  ;;  %v4538_v4 = vld [vmem:[#allocation2 + $0x14] ss:$24 sps:$4 sm:$0xff]   ;;  %v5274_v6 = vld [vmem:[%s5354_s0 + $0x8] ss:$16 sps:$4 sm:$0xff]  }
  0x9f   :  { %1446 = vmatprep.subr.bf16.mxu1 %v4448_v7  ;;  %1390 = vmatprep.mubr.bf16.mxu0 %v5267_v30  ;;  %v4536_v7 = vld [vmem:[#allocation2 + $0x10] ss:$24 sps:$4 sm:$0xff]  }
  0xa0   :  { %1476 = vmatprep.mubr.bf16.mxu1 %v5267_v30 }
  0xa1   :  { %1361 = vmatpush1.bf16.msra.mxu0 %v4443_v8  ;;  %v4541_v8 = vld [vmem:[#allocation2 + $0x44] ss:$24 sps:$4 sm:$0xff]  }
  0xa2   :  { %1447 = vmatpush1.bf16.msra.mxu1 %v4446_v9  ;;  %1362 = vmatprep.subr.bf16.mxu0 %v4451_v10  ;;  %v4539_v9 = vld [vmem:[#allocation2 + $0x40] ss:$24 sps:$4 sm:$0xff]   ;;  %v4544_v10 = vld [vmem:[#allocation2 + $0x74] ss:$24 sps:$4 sm:$0xff]  }
  0xa3   :  { %1448 = vmatprep.subr.bf16.mxu1 %v4454_v11  ;;  %v4542_v11 = vld [vmem:[#allocation2 + $0x70] ss:$24 sps:$4 sm:$0xff]  }
  0xa5   :  { %1363 = vmatpush1.bf16.msra.mxu0 %v4449_v12  ;;  %v4547_v12 = vld [vmem:[#allocation2 + $0xa4] ss:$24 sps:$4 sm:$0xff]  }
  0xa6   :  { %1449 = vmatpush1.bf16.msra.mxu1 %v4452_v13  ;;  %1364 = vmatprep.subr.bf16.mxu0 %v4457_v14  ;;  %v4545_v13 = vld [vmem:[#allocation2 + $0xa0] ss:$24 sps:$4 sm:$0xff]   ;;  %v4550_v14 = vld [vmem:[#allocation2 + $0xd4] ss:$24 sps:$4 sm:$0xff]  }
  0xa7   :  { %1450 = vmatprep.subr.bf16.mxu1 %v4460_v15  ;;  %v4548_v15 = vld [vmem:[#allocation2 + $0xd0] ss:$24 sps:$4 sm:$0xff]  }
  0xa9   :  { %1365 = vmatpush1.bf16.msra.mxu0 %v4455_v16  ;;  %v4553_v16 = vld [vmem:[#allocation2 + $0x104] ss:$24 sps:$4 sm:$0xff]  }
  0xaa   :  { %1451 = vmatpush1.bf16.msra.mxu1 %v4458_v17  ;;  %1366 = vmatprep.subr.bf16.mxu0 %v4463_v18  ;;  %v4551_v17 = vld [vmem:[#allocation2 + $0x100] ss:$24 sps:$4 sm:$0xff]   ;;  %v4556_v18 = vld [vmem:[#allocation2 + $0x134] ss:$24 sps:$4 sm:$0xff]  }
  0xab   :  { %1452 = vmatprep.subr.bf16.mxu1 %v4466_v19  ;;  %v4554_v19 = vld [vmem:[#allocation2 + $0x130] ss:$24 sps:$4 sm:$0xff]  }
  0xad   :  { %1367 = vmatpush1.bf16.msra.mxu0 %v4461_v20  ;;  %v4559_v20 = vld [vmem:[#allocation2 + $0x164] ss:$24 sps:$4 sm:$0xff]  }
  0xae   :  { %1453 = vmatpush1.bf16.msra.mxu1 %v4464_v21  ;;  %1368 = vmatprep.subr.bf16.mxu0 %v4469_v22  ;;  %v4562_v21 = vld [vmem:[#allocation2 + $0x194] ss:$24 sps:$4 sm:$0xff]   ;;  %v4560_v22 = vld [vmem:[#allocation2 + $0x190] ss:$24 sps:$4 sm:$0xff]  }
  0xaf   :  { %1454 = vmatprep.subr.bf16.mxu1 %v4472_v23  ;;  %v4565_v23 = vld [vmem:[#allocation2 + $0x1c4] ss:$24 sps:$4 sm:$0xff]  }
  0xb1   :  { %1369 = vmatpush1.bf16.msra.mxu0 %v4467_v24  ;;  %v4563_v24 = vld [vmem:[#allocation2 + $0x1c0] ss:$24 sps:$4 sm:$0xff]  }
  0xb2   :  { %1455 = vmatpush1.bf16.msra.mxu1 %v4470_v25  ;;  %1370 = vmatprep.subr.bf16.mxu0 %v4475_v26  ;;  %v4568_v25 = vld [vmem:[#allocation2 + $0x1f4] ss:$24 sps:$4 sm:$0xff]   ;;  %v4566_v26 = vld [vmem:[#allocation2 + $0x1f0] ss:$24 sps:$4 sm:$0xff]  }
  0xb3   :  { %1456 = vmatprep.subr.bf16.mxu1 %v4478_v27  ;;  %v4571_v27 = vld [vmem:[#allocation2 + $0x224] ss:$24 sps:$4 sm:$0xff]  }
  0xb5   :  { %1371 = vmatpush1.bf16.msra.mxu0 %v4473_v28  ;;  %v4569_v28 = vld [vmem:[#allocation2 + $0x220] ss:$24 sps:$4 sm:$0xff]  }
  0xb6   :  { %1457 = vmatpush1.bf16.msra.mxu1 %v4476_v29  ;;  %1372 = vmatprep.subr.bf16.mxu0 %v4481_v31  ;;  %v4574_v29 = vld [vmem:[#allocation2 + $0x254] ss:$24 sps:$4 sm:$0xff]   ;;  %v4572_v31 = vld [vmem:[#allocation2 + $0x250] ss:$24 sps:$4 sm:$0xff]  }
  0xb7   :  { %1458 = vmatprep.subr.bf16.mxu1 %v4484_v32  ;;  %v4577_v32 = vld [vmem:[#allocation2 + $0x284] ss:$24 sps:$4 sm:$0xff]  }
  0xb9   :  { %1373 = vmatpush1.bf16.msra.mxu0 %v4479_v33  ;;  %v4575_v33 = vld [vmem:[#allocation2 + $0x280] ss:$24 sps:$4 sm:$0xff]  }
  0xba   :  { %1459 = vmatpush1.bf16.msra.mxu1 %v4482_v34  ;;  %1374 = vmatprep.subr.bf16.mxu0 %v4487_v35  ;;  %v4580_v34 = vld [vmem:[#allocation2 + $0x2b4] ss:$24 sps:$4 sm:$0xff]   ;;  %v4578_v35 = vld [vmem:[#allocation2 + $0x2b0] ss:$24 sps:$4 sm:$0xff]  }
  0xbb   :  { %1460 = vmatprep.subr.bf16.mxu1 %v4490_v36  ;;  %v4583_v36 = vld [vmem:[#allocation2 + $0x2e4] ss:$24 sps:$4 sm:$0xff]  }
  0xbd   :  { %1375 = vmatpush1.bf16.msra.mxu0 %v4485_v37  ;;  %v4581_v37 = vld [vmem:[#allocation2 + $0x2e0] ss:$24 sps:$4 sm:$0xff]  }
  0xbe   :  { %1461 = vmatpush1.bf16.msra.mxu1 %v4488_v38  ;;  %1376 = vmatprep.subr.bf16.mxu0 %v4493_v39  ;;  %v4586_v38 = vld [vmem:[#allocation2 + $0x314] ss:$24 sps:$4 sm:$0xff]   ;;  %v4584_v39 = vld [vmem:[#allocation2 + $0x310] ss:$24 sps:$4 sm:$0xff]  }
  0xbf   :  { %1462 = vmatprep.subr.bf16.mxu1 %v4496_v40  ;;  %v4589_v40 = vld [vmem:[#allocation2 + $0x344] ss:$24 sps:$4 sm:$0xff]  }
  0xc1   :  { %1377 = vmatpush1.bf16.msra.mxu0 %v4491_v41  ;;  %v4587_v41 = vld [vmem:[#allocation2 + $0x340] ss:$24 sps:$4 sm:$0xff]  }
  0xc2   :  { %1463 = vmatpush1.bf16.msra.mxu1 %v4494_v42  ;;  %1378 = vmatprep.subr.bf16.mxu0 %v4499_v43  ;;  %v4592_v42 = vld [vmem:[#allocation2 + $0x374] ss:$24 sps:$4 sm:$0xff]   ;;  %v4590_v43 = vld [vmem:[#allocation2 + $0x370] ss:$24 sps:$4 sm:$0xff]  }
  0xc3   :  { %1464 = vmatprep.subr.bf16.mxu1 %v4502_v44  ;;  %v4595_v44 = vld [vmem:[#allocation2 + $0x3a4] ss:$24 sps:$4 sm:$0xff]  }
  0xc5   :  { %1379 = vmatpush1.bf16.msra.mxu0 %v4497_v45  ;;  %v4593_v45 = vld [vmem:[#allocation2 + $0x3a0] ss:$24 sps:$4 sm:$0xff]  }
  0xc6   :  { %1465 = vmatpush1.bf16.msra.mxu1 %v4500_v46  ;;  %1380 = vmatprep.subr.bf16.mxu0 %v4505_v48  ;;  %v4598_v46 = vld [vmem:[#allocation2 + $0x3d4] ss:$24 sps:$4 sm:$0xff]   ;;  %v4596_v48 = vld [vmem:[#allocation2 + $0x3d0] ss:$24 sps:$4 sm:$0xff]  }
  0xc7   :  { %1466 = vmatprep.subr.bf16.mxu1 %v4508_v49  ;;  %v4601_v49 = vld [vmem:[#allocation2 + $0x404] ss:$24 sps:$4 sm:$0xff]  }
  0xc9   :  { %1381 = vmatpush1.bf16.msra.mxu0 %v4503_v50  ;;  %v4599_v50 = vld [vmem:[#allocation2 + $0x400] ss:$24 sps:$4 sm:$0xff]  }
  0xca   :  { %1467 = vmatpush1.bf16.msra.mxu1 %v4506_v51  ;;  %1382 = vmatprep.subr.bf16.mxu0 %v4511_v52  ;;  %v4604_v51 = vld [vmem:[#allocation2 + $0x434] ss:$24 sps:$4 sm:$0xff]   ;;  %v4607_v52 = vld [vmem:[#allocation2 + $0x464] ss:$24 sps:$4 sm:$0xff]  }
  0xcb   :  { %1468 = vmatprep.subr.bf16.mxu1 %v4514_v53  ;;  %v4610_v53 = vld [vmem:[#allocation2 + $0x494] ss:$24 sps:$4 sm:$0xff]  }
  0xcd   :  { %1383 = vmatpush1.bf16.msra.mxu0 %v4509_v54  ;;  %v4608_v54 = vld [vmem:[#allocation2 + $0x490] ss:$24 sps:$4 sm:$0xff]  }
  0xce   :  { %1469 = vmatpush1.bf16.msra.mxu1 %v4512_v55  ;;  %1384 = vmatprep.subr.bf16.mxu0 %v4517_v56  ;;  %v4632_v55 = vld [vmem:[#allocation4] ss:$12 sps:$4 sm:$0xff]   ;;  %v4634_v56 = vld [vmem:[#allocation4 + $0x4] ss:$12 sps:$4 sm:$0xff]  }
  0xcf   :  { %1470 = vmatprep.subr.bf16.mxu1 %v4520_v57  ;;  %v4613_v57 = vld [vmem:[#allocation2 + $0x4c4] ss:$24 sps:$4 sm:$0xff]  }
  0xd1   :  { %1385 = vmatpush1.bf16.msra.mxu0 %v4515_v58  ;;  %v4637_v58 = vld [vmem:[#allocation4 + $0x1c] ss:$12 sps:$4 sm:$0xff]  }
  0xd2   :  { %1471 = vmatpush1.bf16.msra.mxu1 %v4518_v59  ;;  %1386 = vmatprep.subr.bf16.mxu0 %v4523_v60  ;;  %v4635_v59 = vld [vmem:[#allocation4 + $0x18] ss:$12 sps:$4 sm:$0xff]  }
  0xd3   :  { %1472 = vmatprep.subr.bf16.mxu1 %v4526_v61  ;;  %v4611_v60 = vld [vmem:[#allocation2 + $0x4c0] ss:$24 sps:$4 sm:$0xff]  }
  0xd4   :  { %v4640_v61 = vld [vmem:[#allocation4 + $0x34] ss:$12 sps:$4 sm:$0xff]  }
  0xd5   :  { %1387 = vmatpush1.bf16.msra.mxu0 %v4521_v62  ;;  %v4616_v62 = vld [vmem:[#allocation2 + $0x4f4] ss:$24 sps:$4 sm:$0xff]  }
  0xd6   :  { %1473 = vmatpush1.bf16.msra.mxu1 %v4524_v63  ;;  %1388 = vmatprep.subr.bf16.mxu0 %v4529_v0  ;;  %v4638_v63 = vld [vmem:[#allocation4 + $0x30] ss:$12 sps:$4 sm:$0xff]  }
  0xd7   :  { %1474 = vmatprep.subr.bf16.mxu1 %v4532_v1  ;;  %v4614_v0 = vld [vmem:[#allocation2 + $0x4f0] ss:$24 sps:$4 sm:$0xff]   ;;  %v4643_v1 = vld [vmem:[#allocation4 + $0x4c] ss:$12 sps:$4 sm:$0xff]  }
  0xd9   :  { %1389 = vmatpush1.bf16.msra.mxu0 %v4527_v2  ;;  %v4619_v2 = vld [vmem:[#allocation2 + $0x524] ss:$24 sps:$4 sm:$0xff]  }
  0xda   :  { %1475 = vmatpush1.bf16.msra.mxu1 %v4530_v3  ;;  %1487 = vmatprep.subr.bf16.mxu0 %v4538_v4  ;;  %v4617_v3 = vld [vmem:[#allocation2 + $0x520] ss:$24 sps:$4 sm:$0xff]   ;;  %v4641_v4 = vld [vmem:[#allocation4 + $0x48] ss:$12 sps:$4 sm:$0xff]  }
  0xdb   :  { %2085 = vmatprep.subr.bf16.mxu1 %v4634_v56  ;;  %v4680_v56 = vld [vmem:[#allocation4 + $0x150] ss:$12 sps:$4 sm:$0xff]  }
  0xdc   :  { %1391 = vmatmul.mubr.bf16.vlgmr.msra.gmra.mrb[0].mxu0 %v5274_v6 }
  0xdd   :  { %1477 = vmatmul.mubr.bf16.vlgmr.msra.gmra.mrb[0].mxu1 %v5274_v6  ;;  %1488 = vmatpush1.bf16.msra.mxu0 %v4536_v7  ;;  %v4622_v7 = vld [vmem:[#allocation2 + $0x554] ss:$24 sps:$4 sm:$0xff]  }
  0xde   :  { %1519 = vmatprep.mubr.bf16.mxu0 %v5253_v47  ;;  %1489 = vmatprep.subr.bf16.mxu0 %v4541_v8  ;;  %v4557_v47 = vld [vmem:[#allocation2 + $0x160] ss:$24 sps:$4 sm:$0xff]   ;;  %v4646_v8 = vld [vmem:[#allocation4 + $0x64] ss:$12 sps:$4 sm:$0xff]  }
  0xdf   :  { %2086 = vmatpush1.bf16.msra.mxu1 %v4632_v55 }
  0xe0   :  { %2087 = vmatprep.subr.bf16.mxu1 %v4637_v58 }
  0xe1   :  { %1490 = vmatpush1.bf16.msra.mxu0 %v4539_v9  ;;  %v4644_v9 = vld [vmem:[#allocation4 + $0x60] ss:$12 sps:$4 sm:$0xff]  }
  0xe2   :  { %1491 = vmatprep.subr.bf16.mxu0 %v4544_v10  ;;  %v4620_v10 = vld [vmem:[#allocation2 + $0x550] ss:$24 sps:$4 sm:$0xff]  }
  0xe3   :  { %2088 = vmatpush1.bf16.msra.mxu1 %v4635_v59 }
  0xe4   :  { %2089 = vmatprep.subr.bf16.mxu1 %v4640_v61 }
  0xe5   :  { %1492 = vmatpush1.bf16.msra.mxu0 %v4542_v11  ;;  %v4649_v11 = vld [vmem:[#allocation4 + $0x7c] ss:$12 sps:$4 sm:$0xff]  }
  0xe6   :  { %1493 = vmatprep.subr.bf16.mxu0 %v4547_v12  ;;  %v4625_v12 = vld [vmem:[#allocation2 + $0x584] ss:$24 sps:$4 sm:$0xff]  }
  0xe7   :  { %2090 = vmatpush1.bf16.msra.mxu1 %v4638_v63  ;;  %v4686_v63 = vld [vmem:[#allocation4 + $0x16c] ss:$12 sps:$4 sm:$0xff]  }
  0xe8   :  { %2091 = vmatprep.subr.bf16.mxu1 %v4643_v1  ;;  %v4684_v1 = vld [vmem:[#allocation4 + $0x168] ss:$12 sps:$4 sm:$0xff]  }
  0xe9   :  { %1494 = vmatpush1.bf16.msra.mxu0 %v4545_v13  ;;  %v4647_v13 = vld [vmem:[#allocation4 + $0x78] ss:$12 sps:$4 sm:$0xff]  }
  0xea   :  { %1495 = vmatprep.subr.bf16.mxu0 %v4550_v14  ;;  %v4623_v14 = vld [vmem:[#allocation2 + $0x580] ss:$24 sps:$4 sm:$0xff]  }
  0xeb   :  { %2092 = vmatpush1.bf16.msra.mxu1 %v4641_v4 }
  0xec   :  { %2093 = vmatprep.subr.bf16.mxu1 %v4646_v8 }
  0xed   :  { %1496 = vmatpush1.bf16.msra.mxu0 %v4548_v15  ;;  %v4652_v15 = vld [vmem:[#allocation4 + $0x94] ss:$12 sps:$4 sm:$0xff]  }
  0xee   :  { %1497 = vmatprep.subr.bf16.mxu0 %v4553_v16  ;;  %v4628_v16 = vld [vmem:[#allocation2 + $0x5b4] ss:$24 sps:$4 sm:$0xff]  }
  0xef   :  { %2094 = vmatpush1.bf16.msra.mxu1 %v4644_v9  ;;  %v4733_v9 = vld [vmem:[#allocation6 + $0xc] ss:$16 sps:$4 sm:$0xff]  }
  0xf0   :  { %2095 = vmatprep.subr.bf16.mxu1 %v4649_v11 }
  0xf1   :  { %1498 = vmatpush1.bf16.msra.mxu0 %v4551_v17  ;;  %v4650_v17 = vld [vmem:[#allocation4 + $0x90] ss:$12 sps:$4 sm:$0xff]  }
  0xf2   :  { %1499 = vmatprep.subr.bf16.mxu0 %v4556_v18  ;;  %v4626_v18 = vld [vmem:[#allocation2 + $0x5b0] ss:$24 sps:$4 sm:$0xff]  }
  0xf3   :  { %2096 = vmatpush1.bf16.msra.mxu1 %v4647_v13 }
  0xf4   :  { %2097 = vmatprep.subr.bf16.mxu1 %v4652_v15 }
  0xf5   :  { %1500 = vmatpush1.bf16.msra.mxu0 %v4554_v19  ;;  %v4655_v19 = vld [vmem:[#allocation4 + $0xac] ss:$12 sps:$4 sm:$0xff]  }
  0xf6   :  { %1501 = vmatprep.subr.bf16.mxu0 %v4559_v20  ;;  %v4631_v20 = vld [vmem:[#allocation2 + $0x5e4] ss:$24 sps:$4 sm:$0xff]  }
  0xf7   :  { %2098 = vmatpush1.bf16.msra.mxu1 %v4650_v17 }
  0xf8   :  { %2099 = vmatprep.subr.bf16.mxu1 %v4655_v19 }
  0xf9   :  { %1502 = vmatpush1.bf16.msra.mxu0 %v4557_v47  ;;  %v4653_v47 = vld [vmem:[#allocation4 + $0xa8] ss:$12 sps:$4 sm:$0xff]  }
  0xfa   :  { %1503 = vmatprep.subr.bf16.mxu0 %v4562_v21  ;;  %v4629_v21 = vld [vmem:[#allocation2 + $0x5e0] ss:$24 sps:$4 sm:$0xff]  }
  0xfb   :  { %2100 = vmatpush1.bf16.msra.mxu1 %v4653_v47 }
  0xfd   :  { %1504 = vmatpush1.bf16.msra.mxu0 %v4560_v22  ;;  %v4658_v22 = vld [vmem:[#allocation4 + $0xc4] ss:$12 sps:$4 sm:$0xff]  }
  0xfe   :  { %1505 = vmatprep.subr.bf16.mxu0 %v4565_v23  ;;  %v4656_v23 = vld [vmem:[#allocation4 + $0xc0] ss:$12 sps:$4 sm:$0xff]   ;;  %2101 = vmatprep.subr.bf16.mxu1 %v4658_v22 }
  0xff   :  { %2102 = vmatpush1.bf16.msra.mxu1 %v4656_v23 }
 0x101   :  { %1506 = vmatpush1.bf16.msra.mxu0 %v4563_v24  ;;  %v4659_v24 = vld [vmem:[#allocation4 + $0x188] ss:$12 sps:$4 sm:$0xff]  }
 0x102   :  { %1507 = vmatprep.subr.bf16.mxu0 %v4568_v25  ;;  %v4662_v25 = vld [vmem:[#allocation4 + $0xdc] ss:$12 sps:$4 sm:$0xff]  }
 0x103   :  { %2103 = vmatprep.subr.bf16.mxu1 %v4662_v25 }
 0x105   :  { %1508 = vmatpush1.bf16.msra.mxu0 %v4566_v26  ;;  %v5121_v26 = vmov 0.0  }
 0x106   :  { %1509 = vmatprep.subr.bf16.mxu0 %v4571_v27  ;;  %v4660_v27 = vld [vmem:[#allocation4 + $0xd8] ss:$12 sps:$4 sm:$0xff]  }
 0x107   :  { %2104 = vmatpush1.bf16.msra.mxu1 %v4660_v27 }
 0x109   :  { %1510 = vmatpush1.bf16.msra.mxu0 %v4569_v28  ;;  %v4663_v28 = vld [vmem:[#allocation4 + $0x1a0] ss:$12 sps:$4 sm:$0xff]  }
 0x10a   :  { %1511 = vmatprep.subr.bf16.mxu0 %v4574_v29  ;;  %v4666_v29 = vld [vmem:[#allocation4 + $0xf4] ss:$12 sps:$4 sm:$0xff]  }
 0x10b   :  { %2105 = vmatprep.subr.bf16.mxu1 %v4666_v29 }
 0x10d   :  { %1512 = vmatpush1.bf16.msra.mxu0 %v4572_v31  ;;  %v4664_v31 = vld [vmem:[#allocation4 + $0xf0] ss:$12 sps:$4 sm:$0xff]  }
 0x10e   :  { %1513 = vmatprep.subr.bf16.mxu0 %v4577_v32  ;;  %v4667_v32 = vld [vmem:[#allocation4 + $0x1b8] ss:$12 sps:$4 sm:$0xff]   ;;  %2106 = vmatpush1.bf16.msra.mxu1 %v4664_v31 }
 0x111   :  { %1514 = vmatpush1.bf16.msra.mxu0 %v4575_v33  ;;  %v4670_v33 = vld [vmem:[#allocation4 + $0x10c] ss:$12 sps:$4 sm:$0xff]  }
 0x112   :  { %1515 = vmatprep.subr.bf16.mxu0 %v4580_v34  ;;  %v4668_v34 = vld [vmem:[#allocation4 + $0x108] ss:$12 sps:$4 sm:$0xff]   ;;  %2107 = vmatprep.subr.bf16.mxu1 %v4670_v33 }
 0x113   :  { %2108 = vmatpush1.bf16.msra.mxu1 %v4668_v34 }
 0x115   :  { %1516 = vmatpush1.bf16.msra.mxu0 %v4578_v35  ;;  %v4674_v35 = vld [vmem:[#allocation4 + $0x124] ss:$12 sps:$4 sm:$0xff]  }
 0x116   :  { %1517 = vmatprep.subr.bf16.mxu0 %v4583_v36  ;;  %v4672_v36 = vld [vmem:[#allocation4 + $0x120] ss:$12 sps:$4 sm:$0xff]   ;;  %2109 = vmatprep.subr.bf16.mxu1 %v4674_v35 }
 0x117   :  { %2110 = vmatpush1.bf16.msra.mxu1 %v4672_v36 }
 0x119   :  { %1518 = vmatpush1.bf16.msra.mxu0 %v4581_v37  ;;  %v4675_v37 = vld [vmem:[#allocation4 + $0x1e8] ss:$12 sps:$4 sm:$0xff]  }
 0x11a   :  { %1530 = vmatprep.subr.bf16.mxu0 %v4586_v38  ;;  %v4678_v38 = vld [vmem:[#allocation4 + $0x13c] ss:$12 sps:$4 sm:$0xff]  }
 0x11b   :  { %2111 = vmatprep.subr.bf16.mxu1 %v4678_v38  ;;  %v4688_v38 = vld [vmem:[#allocation4 + $0x180] ss:$12 sps:$4 sm:$0xff]  }
 0x11c   :  { %1520 = vmatmul.mubr.bf16.vlgmr.msra.gmra.mrb[4].mxu0 %v5260_v5  ;;  %v4602_v5 = vld [vmem:[#allocation2 + $0x430] ss:$24 sps:$4 sm:$0xff]  }
 0x11d   :  { %1531 = vmatpush1.bf16.msra.mxu0 %v4584_v39  ;;  %1562 = vmatprep.mubr.bf16.mxu0 %v5267_v30  ;;  %v4605_v30 = vld [vmem:[#allocation2 + $0x460] ss:$24 sps:$4 sm:$0xff]  }
 0x11e   :  { %1532 = vmatprep.subr.bf16.mxu0 %v4589_v40  ;;  %v4676_v39 = vld [vmem:[#allocation4 + $0x138] ss:$12 sps:$4 sm:$0xff]   ;;  %v305_v40 = vlaneseq }
 0x11f   :  { %2112 = vmatpush1.bf16.msra.mxu1 %v4676_v39 }
 0x121   :  { %1533 = vmatpush1.bf16.msra.mxu0 %v4587_v41  ;;  %v306_v41 = vshrl.u32 %v305_v40, 7  ;;  %v4693_v40 = vld [vmem:[#allocation4 + $0x19c] ss:$12 sps:$4 sm:$0xff]  }
 0x122   :  { %1534 = vmatprep.subr.bf16.mxu0 %v4592_v42 }
 0x123   :  { %v5288_v42 = vsub.s32 0, %v306_v41  ;;  %v323_v11 = vsub.s32 4, %v306_v41  ;;  %v327_v13 = vsub.s32 5, %v306_v41 }
 0x125   :  { %1535 = vmatpush1.bf16.msra.mxu0 %v4590_v43  ;;  %v303_v43 = vld [vmem:[%s5356_s2] sm:$0x3f] }
 0x126   :  { %1536 = vmatprep.subr.bf16.mxu0 %v4595_v44  ;;  %v5293_v44 = vsub.s32 3, %v306_v41  ;;  %v324_v15 = vrot.slane %v303_v43, %v323_v11  ;;  %v328_v17 = vrot.slane %v303_v43, %v327_v13  ;;  %v4716_v11 = vld [vmem:[#allocation4 + $0xf8] ss:$12 sps:$4 sm:$0xff]  }
 0x127   :  { %v4717_v13 = vld [vmem:[#allocation4 + $0x38] ss:$12 sps:$4 sm:$0xff]  }
 0x129   :  { %1537 = vmatpush1.bf16.msra.mxu0 %v4593_v45  ;;  %v308_v45 = vrot.slane %v303_v43, %v5288_v42 }
 0x12a   :  { %1538 = vmatprep.subr.bf16.mxu0 %v4598_v46  ;;  %v320_v46 = vrot.slane %v303_v43, %v5293_v44 }
 0x12d   :  { %1539 = vmatpush1.bf16.msra.mxu0 %v4596_v48  ;;  %v4679_v48 = vld [vmem:[#allocation4 + $0x200] ss:$12 sps:$4 sm:$0xff]  }
 0x12e   :  { %1540 = vmatprep.subr.bf16.mxu0 %v4601_v49 }
 0x131   :  { %1541 = vmatpush1.bf16.msra.mxu0 %v4599_v50 }
 0x132   :  { %1542 = vmatprep.subr.bf16.mxu0 %v4604_v51 }
 0x135   :  { %1543 = vmatpush1.bf16.msra.mxu0 %v4602_v5 }
 0x136   :  { %1544 = vmatprep.subr.bf16.mxu0 %v4607_v52 }
 0x139   :  { %1545 = vmatpush1.bf16.msra.mxu0 %v4605_v30  ;;  %v4682_v30 = vld [vmem:[#allocation4 + $0x154] ss:$12 sps:$4 sm:$0xff]  }
 0x13a   :  { %1546 = vmatprep.subr.bf16.mxu0 %v4610_v53  ;;  %2113 = vmatprep.subr.bf16.mxu1 %v4682_v30  ;;  %v4751_v30 = vld [vmem:[#allocation6 + $0x6c] ss:$16 sps:$4 sm:$0xff]  }
 0x13b   :  { %2114 = vmatpush1.bf16.msra.mxu1 %v4680_v56  ;;  %v4757_v56 = vld [vmem:[#allocation6 + $0x8c] ss:$16 sps:$4 sm:$0xff]  }
 0x13c   :  { %2115 = vmatprep.subr.bf16.mxu1 %v4686_v63  ;;  %v4761_v63 = vld [vmem:[#allocation6 + $0xa8] ss:$16 sps:$4 sm:$0xff]  }
 0x13d   :  { %1547 = vmatpush1.bf16.msra.mxu0 %v4608_v54 }
 0x13e   :  { %1548 = vmatprep.subr.bf16.mxu0 %v4613_v57 }
 0x13f   :  { %2116 = vmatpush1.bf16.msra.mxu1 %v4684_v1  ;;  %v4711_v1 = vld [vmem:[#allocation4 + $0x22c] ss:$12 sps:$4 sm:$0xff]  }
 0x141   :  { %1549 = vmatpush1.bf16.msra.mxu0 %v4611_v60  ;;  %v4683_v60 = vld [vmem:[#allocation4 + $0x218] ss:$12 sps:$4 sm:$0xff]  }
 0x142   :  { %1550 = vmatprep.subr.bf16.mxu0 %v4616_v62 }
 0x145   :  { %1551 = vmatpush1.bf16.msra.mxu0 %v4614_v0 }
 0x146   :  { %1552 = vmatprep.subr.bf16.mxu0 %v4619_v2  ;;  %v4687_v2 = vld [vmem:[#allocation4 + $0x230] ss:$12 sps:$4 sm:$0xff]  }
 0x149   :  { %1553 = vmatpush1.bf16.msra.mxu0 %v4617_v3 }
 0x14a   :  { %1554 = vmatprep.subr.bf16.mxu0 %v4622_v7  ;;  %v4690_v7 = vld [vmem:[#allocation4 + $0x184] ss:$12 sps:$4 sm:$0xff]  }
 0x14b   :  { %2128 = vmatprep.subr.bf16.mxu1 %v4690_v7  ;;  %v4714_v7 = vld [vmem:[#allocation4 + $0xe0] ss:$12 sps:$4 sm:$0xff]  }
 0x14d   :  { %1555 = vmatpush1.bf16.msra.mxu0 %v4620_v10  ;;  %v5302_v10 = vsub.s32 1, %v306_v41 }
 0x14e   :  { %1556 = vmatprep.subr.bf16.mxu0 %v4625_v12  ;;  %v5304_v12 = vsub.s32 2, %v306_v41  ;;  %v4731_v41 = vld [vmem:[#allocation6 + $0x8] ss:$16 sps:$4 sm:$0xff]  }
 0x151   :  { %1557 = vmatpush1.bf16.msra.mxu0 %v4623_v14  ;;  %v312_v14 = vrot.slane %v303_v43, %v5302_v10 }
 0x152   :  { %1558 = vmatprep.subr.bf16.mxu0 %v4628_v16  ;;  %v316_v16 = vrot.slane %v303_v43, %v5304_v12  ;;  %v4739_v43 = vld [vmem:[#allocation6 + $0x2c] ss:$16 sps:$4 sm:$0xff]  }
 0x155   :  { %1559 = vmatpush1.bf16.msra.mxu0 %v4626_v18 }
 0x156   :  { %1560 = vmatprep.subr.bf16.mxu0 %v4631_v20 }
 0x159   :  { %1561 = vmatpush1.bf16.msra.mxu0 %v4629_v21 }
 0x15a   :  { %4254 = vmatprep.subr.bf16.mxu0 %v5121_v26 }
 0x15c   :  { %1563 = vmatmul.mubr.bf16.vlgmr.msra.gmra.mrb[4].mxu0 %v5274_v6  ;;  %v4671_v6 = vld [vmem:[#allocation4 + $0x1d0] ss:$12 sps:$4 sm:$0xff]  }
 0x15d   :  { %4255 = vmatpush3.bf16.msra.mxu0 %v4659_v24  ;;  %4270 = vmatprep.mubr.msk.bf16.mxu0 %vm5122_vm0, %v5121_v26 }
 0x15e   :  { %4256 = vmatprep.subr.bf16.mxu0 %v5121_v26 }
 0x161   :  { %4257 = vmatpush3.bf16.msra.mxu0 %v4663_v28 }
 0x162   :  { %4258 = vmatprep.subr.bf16.mxu0 %v5121_v26 }
 0x165   :  { %4259 = vmatpush3.bf16.msra.mxu0 %v4667_v32 }
 0x166   :  { %4260 = vmatprep.subr.bf16.mxu0 %v5121_v26 }
 0x169   :  { %4261 = vmatpush3.bf16.msra.mxu0 %v4671_v6 }
 0x16a   :  { %4262 = vmatprep.subr.bf16.mxu0 %v5121_v26 }
 0x16d   :  { %4263 = vmatpush3.bf16.msra.mxu0 %v4675_v37 }
 0x16e   :  { %4264 = vmatprep.subr.bf16.mxu0 %v5121_v26 }
 0x171   :  { %4265 = vmatpush3.bf16.msra.mxu0 %v4679_v48  ;;  %v4696_v48 = vld [vmem:[#allocation4 + $0x1b4] ss:$12 sps:$4 sm:$0xff]  }
 0x172   :  { %4266 = vmatprep.subr.bf16.mxu0 %v5121_v26 }
 0x175   :  { %4267 = vmatpush3.bf16.msra.mxu0 %v4683_v60  ;;  %v4763_v60 = vld [vmem:[#allocation6 + $0xac] ss:$16 sps:$4 sm:$0xff]  }
 0x176   :  { %4268 = vmatprep.subr.bf16.mxu0 %v5121_v26 }
 0x179   :  { %4269 = vmatpush3.bf16.msra.mxu0 %v4687_v2  ;;  %v4709_v2 = vld [vmem:[#allocation4 + $0x228] ss:$12 sps:$4 sm:$0xff]  }
 0x17a   :  { %2946 = vmatprep.subr.bf16.mxu0 %v4733_v9  ;;  %v4715_v9 = vld [vmem:[#allocation4 + $0x20] ss:$12 sps:$4 sm:$0xff]  }
 0x1af   :  { %v1392_v49 = vpop.f32.mrb[0].mxu0 }
 0x1b0   :  { %v1478_v50 = vpop.f32.mrb[0].mxu1  ;;  %v4274_v51 = vadd.f32 %v1392_v49, %v308_v45  ;;  %v1394_v5 = vpop.f32.mrb[1].mxu0  ;;  %v4737_v49 = vld [vmem:[#allocation6 + $0x28] ss:$16 sps:$4 sm:$0xff]  }
 0x1b1   :  { %v1480_v52 = vpop.f32.mrb[1].mxu1  ;;  %v1396_v54 = vpop.f32.mrb[2].mxu0  ;;  %v4275_v19 = vadd.f32 %v1394_v5, %v312_v14  ;;  %v4278_v21 = vadd.f32 %v1478_v50, %v316_v16  ;;  %v4745_v50 = vld [vmem:[#allocation6 + $0x4c] ss:$16 sps:$4 sm:$0xff]  }
 0x1b2   :  { %v4279_v53 = vadd.f32 %v1480_v52, %v320_v46  ;;  %v1482_v55 = vpop.f32.mrb[2].mxu1  ;;  %v4276_v57 = vadd.f32 %v1396_v54, %v308_v45  ;;  %v1398_v58 = vpop.f32.mrb[3].mxu0  ;;  %v4691_v45 = vld [vmem:[#allocation4 + $0x198] ss:$12 sps:$4 sm:$0xff]  }
 0x1b3   :  { %v1484_v59 = vpop.f32.mrb[3].mxu1  ;;  %v4277_v24 = vadd.f32 %v1398_v58, %v312_v14  ;;  %v4280_v28 = vadd.f32 %v1482_v55, %v316_v16  ;;  %v4699_v5 = vld [vmem:[#allocation4 + $0x1cc] ss:$12 sps:$4 sm:$0xff]   ;;  %v4702_v54 = vld [vmem:[#allocation4 + $0x1e4] ss:$12 sps:$4 sm:$0xff]  }
 0x1b4   :  { %v1573_v61 = vmax.f32 %v4274_v51, %v4279_v53  ;;  %v4281_v62 = vadd.f32 %v1484_v59, %v320_v46  ;;  %v5123_v46 = vmov 0   ;;  %v4694_v51 = vld [vmem:[#allocation4 + $0x1b0] ss:$12 sps:$4 sm:$0xff]   ;;  %v4743_v52 = vld [vmem:[#allocation6 + $0x48] ss:$16 sps:$4 sm:$0xff]  }
 0x1b5   :  { %v4697_v53 = vld [vmem:[#allocation4 + $0x1c8] ss:$12 sps:$4 sm:$0xff]   ;;  %v4718_v14 = vld [vmem:[#allocation4 + $0x110] ss:$12 sps:$4 sm:$0xff]  }
 0x1b6   :  { %v1576_v0 = vmax.f32 %v4276_v57, %v4281_v62  ;;  %v1579_v3 = vmax.f32 %v1573_v61, 0.0  ;;  %v4749_v55 = vld [vmem:[#allocation6 + $0x68] ss:$16 sps:$4 sm:$0xff]   ;;  %v4700_v57 = vld [vmem:[#allocation4 + $0x1e0] ss:$12 sps:$4 sm:$0xff]  }
 0x1b7   :  { %v4705_v58 = vld [vmem:[#allocation4 + $0x1fc] ss:$12 sps:$4 sm:$0xff]   ;;  %v4703_v61 = vld [vmem:[#allocation4 + $0x1f8] ss:$12 sps:$4 sm:$0xff]   ;;  %v4708_v62 = vld [vmem:[#allocation4 + $0x214] ss:$12 sps:$4 sm:$0xff]  }
 0x1b8   :  { %v1582_v4 = vmax.f32 %v1576_v0, 0.0  ;;  %v4755_v59 = vld [vmem:[#allocation6 + $0x88] ss:$16 sps:$4 sm:$0xff]   ;;  %v4706_v0 = vld [vmem:[#allocation4 + $0x210] ss:$12 sps:$4 sm:$0xff]  }
 0x1b9   :  { %v4720_v16 = vld [vmem:[#allocation4 + $0x128] ss:$12 sps:$4 sm:$0xff]  }
 0x1ba   :  { %v5299_v8 = vpack.c.bf16 %v1582_v4, %v1579_v3  ;;  %v4712_v3 = vld [vmem:[#allocation4 + $0xc8] ss:$12 sps:$4 sm:$0xff]  }
 0x1bb   :  { %v4713_v4 = vld [vmem:[#allocation4 + $0x8] ss:$12 sps:$4 sm:$0xff]  }
 0x22f   :  { %v1564_v18 = vpop.f32.mrb[4].mxu0 }
 0x230   :  { %v4282_v20 = vadd.f32 %v1564_v18, %v324_v15  ;;  %v1566_v47 = vpop.f32.mrb[5].mxu0  ;;  %v4722_v18 = vld [vmem:[#allocation4 + $0x140] ss:$12 sps:$4 sm:$0xff]  }
 0x231   :  { %v4283_v22 = vadd.f32 %v1566_v47, %v328_v17  ;;  %v1568_v23 = vpop.f32.mrb[6].mxu0  ;;  %v4725_v47 = vld [vmem:[#allocation4 + $0x98] ss:$12 sps:$4 sm:$0xff]  }
 0x232   :  { %v1574_v25 = vmax.f32 %v4275_v19, %v4282_v20  ;;  %v4284_v26 = vadd.f32 %v1568_v23, %v324_v15  ;;  %v1570_v27 = vpop.f32.mrb[7].mxu0  ;;  %v4719_v15 = vld [vmem:[#allocation4 + $0x50] ss:$12 sps:$4 sm:$0xff]   ;;  %v4723_v19 = vld [vmem:[#allocation4 + $0x80] ss:$12 sps:$4 sm:$0xff]  }
 0x233   :  { %v1575_v29 = vmax.f32 %v4278_v21, %v4283_v22  ;;  %v4285_v31 = vadd.f32 %v1570_v27, %v328_v17  ;;  %v4721_v17 = vld [vmem:[#allocation4 + $0x68] ss:$12 sps:$4 sm:$0xff]   ;;  %v4724_v20 = vld [vmem:[#allocation4 + $0x158] ss:$12 sps:$4 sm:$0xff]   ;;  %v4726_v21 = vld [vmem:[#allocation4 + $0x170] ss:$12 sps:$4 sm:$0xff]  }
 0x234   :  { %v1577_v32 = vmax.f32 %v4277_v24, %v4284_v26  ;;  %v1580_v34 = vmax.f32 %v1574_v25, 0.0  ;;  %v4727_v22 = vld [vmem:[#allocation4 + $0xb0] ss:$12 sps:$4 sm:$0xff]   ;;  %v4730_v23 = vld [vmem:[#allocation6 + $0x4] ss:$16 sps:$4 sm:$0xff]  }
 0x235   :  { %v1578_v33 = vmax.f32 %v4280_v28, %v4285_v31  ;;  %v1581_v35 = vmax.f32 %v1575_v29, 0.0  ;;  %v4728_v24 = vld [vmem:[#allocation6] ss:$16 sps:$4 sm:$0xff]   ;;  %v4736_v25 = vld [vmem:[#allocation6 + $0x24] ss:$16 sps:$4 sm:$0xff]  }
 0x236   :  { %v1583_v6 = vmax.f32 %v1577_v32, 0.0  ;;  %v4734_v26 = vld [vmem:[#allocation6 + $0x20] ss:$16 sps:$4 sm:$0xff]   ;;  %v4742_v27 = vld [vmem:[#allocation6 + $0x44] ss:$16 sps:$4 sm:$0xff]  }
 0x237   :  { %v1584_v36 = vmax.f32 %v1578_v33, 0.0  ;;  %v4740_v28 = vld [vmem:[#allocation6 + $0x40] ss:$16 sps:$4 sm:$0xff]   ;;  %v4748_v29 = vld [vmem:[#allocation6 + $0x64] ss:$16 sps:$4 sm:$0xff]  }
 0x238   :  { %v5308_v37 = vpack.c.bf16 %v1583_v6, %v1580_v34  ;;  %v4746_v31 = vld [vmem:[#allocation6 + $0x60] ss:$16 sps:$4 sm:$0xff]   ;;  %v4754_v32 = vld [vmem:[#allocation6 + $0x84] ss:$16 sps:$4 sm:$0xff]  }
 0x239   :  { %v1587_v39 = vpack.c.bf16 %v1584_v36, %v1581_v35  ;;  %v4752_v33 = vld [vmem:[#allocation6 + $0x80] ss:$16 sps:$4 sm:$0xff]   ;;  %v4760_v34 = vld [vmem:[#allocation6 + $0xa4] ss:$16 sps:$4 sm:$0xff]   ;;  %v4769_v35 = vld [vmem:[#allocation6 + $0xcc] ss:$16 sps:$4 sm:$0xff]  }
 0x23a   :  { %2117 = vmatprep.mubr.bf16.mxu1 %v5308_v37  ;;  %v4758_v6 = vld [vmem:[#allocation6 + $0xa0] ss:$16 sps:$4 sm:$0xff]  }
 0x23b   :  { %2118 = vmatmul.mubr.bf16.vlgmr.msra.gmra.mrb[4].mxu1 %v5299_v8  ;;  %4271 = vmatmul.mubr.bf16.vlgmr.msra.gmra.mrb[8].mxu0 %v1587_v39  ;;  %v4764_v36 = vld [vmem:[#allocation6 + $0xc0] ss:$16 sps:$4 sm:$0xff]  }
 0x23c   :  { %2129 = vmatpush1.bf16.msra.mxu1 %v4688_v38  ;;  %2160 = vmatprep.mubr.bf16.mxu1 %v5123_v46  ;;  %v4772_v38 = vld [vmem:[#allocation6 + $0xe4] ss:$16 sps:$4 sm:$0xff]  }
 0x23d   :  { %2130 = vmatprep.subr.bf16.mxu1 %v4693_v40  ;;  %2947 = vmatpush1.bf16.msra.mxu0 %v4731_v41  ;;  %v4775_v40 = vld [vmem:[#allocation6 + $0xec] ss:$16 sps:$4 sm:$0xff]  }
 0x23e   :  { %2948 = vmatprep.subr.bf16.mxu0 %v4739_v43  ;;  %v4781_v41 = vld [vmem:[#allocation6 + $0x10c] ss:$16 sps:$4 sm:$0xff]   ;;  %v4770_v43 = vld [vmem:[#allocation6 + $0xe0] ss:$16 sps:$4 sm:$0xff]  }
 0x240   :  { %2131 = vmatpush1.bf16.msra.mxu1 %v4691_v45  ;;  %v4778_v45 = vld [vmem:[#allocation6 + $0x104] ss:$16 sps:$4 sm:$0xff]  }
 0x241   :  { %2132 = vmatprep.subr.bf16.mxu1 %v4696_v48  ;;  %2949 = vmatpush1.bf16.msra.mxu0 %v4737_v49  ;;  %v4779_v48 = vld [vmem:[#allocation6 + $0x108] ss:$16 sps:$4 sm:$0xff]   ;;  %v4787_v49 = vld [vmem:[#allocation6 + $0x12c] ss:$16 sps:$4 sm:$0xff]  }
 0x242   :  { %2950 = vmatprep.subr.bf16.mxu0 %v4745_v50  ;;  %v4776_v50 = vld [vmem:[#allocation6 + $0x100] ss:$16 sps:$4 sm:$0xff]  }
 0x244   :  { %2133 = vmatpush1.bf16.msra.mxu1 %v4694_v51  ;;  %v4784_v51 = vld [vmem:[#allocation6 + $0x124] ss:$16 sps:$4 sm:$0xff]  }
 0x245   :  { %2134 = vmatprep.subr.bf16.mxu1 %v4699_v5  ;;  %2951 = vmatpush1.bf16.msra.mxu0 %v4743_v52  ;;  %v4785_v5 = vld [vmem:[#allocation6 + $0x128] ss:$16 sps:$4 sm:$0xff]   ;;  %v4793_v52 = vld [vmem:[#allocation6 + $0x14c] ss:$16 sps:$4 sm:$0xff]  }
 0x246   :  { %2952 = vmatprep.subr.bf16.mxu0 %v4751_v30  ;;  %v4782_v30 = vld [vmem:[#allocation6 + $0x120] ss:$16 sps:$4 sm:$0xff]  }
 0x248   :  { %2135 = vmatpush1.bf16.msra.mxu1 %v4697_v53  ;;  %v4790_v53 = vld [vmem:[#allocation6 + $0x144] ss:$16 sps:$4 sm:$0xff]  }
 0x249   :  { %2136 = vmatprep.subr.bf16.mxu1 %v4702_v54  ;;  %2953 = vmatpush1.bf16.msra.mxu0 %v4749_v55  ;;  %v4791_v54 = vld [vmem:[#allocation6 + $0x148] ss:$16 sps:$4 sm:$0xff]   ;;  %v4799_v55 = vld [vmem:[#allocation6 + $0x16c] ss:$16 sps:$4 sm:$0xff]  }
 0x24a   :  { %2954 = vmatprep.subr.bf16.mxu0 %v4757_v56  ;;  %v4788_v56 = vld [vmem:[#allocation6 + $0x140] ss:$16 sps:$4 sm:$0xff]  }
 0x24c   :  { %2137 = vmatpush1.bf16.msra.mxu1 %v4700_v57  ;;  %v4796_v57 = vld [vmem:[#allocation6 + $0x164] ss:$16 sps:$4 sm:$0xff]  }
 0x24d   :  { %2138 = vmatprep.subr.bf16.mxu1 %v4705_v58  ;;  %2955 = vmatpush1.bf16.msra.mxu0 %v4755_v59  ;;  %v4797_v58 = vld [vmem:[#allocation6 + $0x168] ss:$16 sps:$4 sm:$0xff]   ;;  %v4805_v59 = vld [vmem:[#allocation6 + $0x18c] ss:$16 sps:$4 sm:$0xff]  }
 0x24e   :  { %2956 = vmatprep.subr.bf16.mxu0 %v4763_v60  ;;  %v4794_v60 = vld [vmem:[#allocation6 + $0x160] ss:$16 sps:$4 sm:$0xff]  }
 0x250   :  { %2139 = vmatpush1.bf16.msra.mxu1 %v4703_v61  ;;  %v4802_v61 = vld [vmem:[#allocation6 + $0x184] ss:$16 sps:$4 sm:$0xff]  }
 0x251   :  { %2140 = vmatprep.subr.bf16.mxu1 %v4708_v62  ;;  %2957 = vmatpush1.bf16.msra.mxu0 %v4761_v63  ;;  %v4803_v62 = vld [vmem:[#allocation6 + $0x188] ss:$16 sps:$4 sm:$0xff]   ;;  %v4811_v63 = vld [vmem:[#allocation6 + $0x1ac] ss:$16 sps:$4 sm:$0xff]  }
 0x252   :  { %2958 = vmatprep.subr.bf16.mxu0 %v4769_v35 }
 0x254   :  { %2141 = vmatpush1.bf16.msra.mxu1 %v4706_v0  ;;  %v4800_v0 = vld [vmem:[#allocation6 + $0x180] ss:$16 sps:$4 sm:$0xff]  }
 0x255   :  { %2142 = vmatprep.subr.bf16.mxu1 %v4711_v1  ;;  %v4808_v1 = vld [vmem:[#allocation6 + $0x1a4] ss:$16 sps:$4 sm:$0xff]  }
 0x258   :  { %2143 = vmatpush1.bf16.msra.mxu1 %v4709_v2  ;;  %v4809_v2 = vld [vmem:[#allocation6 + $0x1a8] ss:$16 sps:$4 sm:$0xff]  }
 0x259   :  { %4201 = vmatprep.subr.bf16.mxu1 %v4712_v3  ;;  %v4806_v3 = vld [vmem:[#allocation6 + $0x1a0] ss:$16 sps:$4 sm:$0xff]  }
 0x25b   :  { %2161 = vmatmul.mubr.bf16.vlgmr.msra.gmra.mrb[4].mxu1 %v1587_v39  ;;  %v4773_v39 = vld [vmem:[#allocation6 + $0xe8] ss:$16 sps:$4 sm:$0xff]  }
 0x25c   :  { %4202 = vmatpush3.bf16.msra.mxu1 %v4713_v4  ;;  %2203 = vmatprep.mubr.bf16.mxu1 %v5308_v37  ;;  %v4767_v37 = vld [vmem:[#allocation6 + $0xc8] ss:$16 sps:$4 sm:$0xff]   ;;  %v4814_v4 = vld [vmem:[#allocation6 + $0x1c4] ss:$16 sps:$4 sm:$0xff]  }
 0x25d   :  { %4203 = vmatprep.subr.bf16.mxu1 %v4714_v7  ;;  %2959 = vmatpush1.bf16.msra.mxu0 %v4767_v37  ;;  %v4817_v7 = vld [vmem:[#allocation6 + $0x1cc] ss:$16 sps:$4 sm:$0xff]  }
 0x25e   :  { %2960 = vmatprep.subr.bf16.mxu0 %v4775_v40  ;;  %v4832_v40 = vld [vmem:[#allocation6 + $0x224] ss:$16 sps:$4 sm:$0xff]  }
 0x260   :  { %4204 = vmatpush3.bf16.msra.mxu1 %v4715_v9  ;;  %v4812_v9 = vld [vmem:[#allocation6 + $0x1c0] ss:$16 sps:$4 sm:$0xff]  }
 0x261   :  { %4205 = vmatprep.subr.bf16.mxu1 %v4716_v11  ;;  %2961 = vmatpush1.bf16.msra.mxu0 %v4773_v39  ;;  %v4815_v11 = vld [vmem:[#allocation6 + $0x1c8] ss:$16 sps:$4 sm:$0xff]  }
 0x262   :  { %2962 = vmatprep.subr.bf16.mxu0 %v4781_v41  ;;  %v4827_v39 = vld [vmem:[#allocation6 + $0x208] ss:$16 sps:$4 sm:$0xff]   ;;  %v4835_v41 = vld [vmem:[#allocation6 + $0x22c] ss:$16 sps:$4 sm:$0xff]  }
 0x264   :  { %4206 = vmatpush3.bf16.msra.mxu1 %v4717_v13  ;;  %v4820_v13 = vld [vmem:[#allocation6 + $0x1e4] ss:$16 sps:$4 sm:$0xff]  }
 0x265   :  { %4207 = vmatprep.subr.bf16.mxu1 %v4718_v14  ;;  %2963 = vmatpush1.bf16.msra.mxu0 %v4779_v48  ;;  %v4823_v14 = vld [vmem:[#allocation6 + $0x1ec] ss:$16 sps:$4 sm:$0xff]   ;;  %v4838_v48 = vld [vmem:[#allocation6 + $0x244] ss:$16 sps:$4 sm:$0xff]  }
 0x266   :  { %2964 = vmatprep.subr.bf16.mxu0 %v4787_v49  ;;  %v4841_v49 = vld [vmem:[#allocation6 + $0x24c] ss:$16 sps:$4 sm:$0xff]  }
 0x268   :  { %4208 = vmatpush3.bf16.msra.mxu1 %v4719_v15  ;;  %v4818_v15 = vld [vmem:[#allocation6 + $0x1e0] ss:$16 sps:$4 sm:$0xff]  }
 0x269   :  { %4209 = vmatprep.subr.bf16.mxu1 %v4720_v16  ;;  %2965 = vmatpush1.bf16.msra.mxu0 %v4785_v5  ;;  %v4821_v16 = vld [vmem:[#allocation6 + $0x1e8] ss:$16 sps:$4 sm:$0xff]   ;;  %v4844_v5 = vld [vmem:[#allocation6 + $0x264] ss:$16 sps:$4 sm:$0xff]  }
 0x26a   :  { %2966 = vmatprep.subr.bf16.mxu0 %v4793_v52  ;;  %v4847_v52 = vld [vmem:[#allocation6 + $0x26c] ss:$16 sps:$4 sm:$0xff]  }
 0x26c   :  { %4210 = vmatpush3.bf16.msra.mxu1 %v4721_v17  ;;  %v4826_v17 = vld [vmem:[#allocation6 + $0x204] ss:$16 sps:$4 sm:$0xff]  }
 0x26d   :  { %4211 = vmatprep.subr.bf16.mxu1 %v4722_v18  ;;  %2967 = vmatpush1.bf16.msra.mxu0 %v4791_v54  ;;  %v4829_v18 = vld [vmem:[#allocation6 + $0x20c] ss:$16 sps:$4 sm:$0xff]   ;;  %v4850_v54 = vld [vmem:[#allocation6 + $0x284] ss:$16 sps:$4 sm:$0xff]  }
 0x26e   :  { %2968 = vmatprep.subr.bf16.mxu0 %v4799_v55  ;;  %v4853_v55 = vld [vmem:[#allocation6 + $0x28c] ss:$16 sps:$4 sm:$0xff]  }
 0x270   :  { %4212 = vmatpush3.bf16.msra.mxu1 %v4723_v19 }
 0x271   :  { %4213 = vmatprep.subr.bf16.mxu1 %v4724_v20  ;;  %2969 = vmatpush1.bf16.msra.mxu0 %v4797_v58  ;;  %v4859_v58 = vld [vmem:[#allocation6 + $0x2ac] ss:$16 sps:$4 sm:$0xff]  }
 0x272   :  { %2970 = vmatprep.subr.bf16.mxu0 %v4805_v59  ;;  %v4854_v59 = vld [vmem:[#allocation6 + $0x2a0] ss:$16 sps:$4 sm:$0xff]  }
 0x274   :  { %4214 = vmatpush3.bf16.msra.mxu1 %v4725_v47 }
 0x275   :  { %4215 = vmatprep.subr.bf16.mxu1 %v4726_v21  ;;  %2971 = vmatpush1.bf16.msra.mxu0 %v4803_v62  ;;  %v4865_v62 = vld [vmem:[#allocation6 + $0x2cc] ss:$16 sps:$4 sm:$0xff]  }
 0x276   :  { %2972 = vmatprep.subr.bf16.mxu0 %v4811_v63 }
 0x278   :  { %4216 = vmatpush3.bf16.msra.mxu1 %v4727_v22  ;;  %v5322_v22 = vld [vmem:[%s5358_s4] sm:$0x7] }
 0x279   :  { %2860 = vmatprep.subr.bf16.mxu1 %v4730_v23  ;;  %2973 = vmatpush1.bf16.msra.mxu0 %v4809_v2  ;;  %v1689_v23 = vrot.slane %v5322_v22, %v5288_v42  ;;  %v4863_v2 = vld [vmem:[#allocation6 + $0x2c8] ss:$16 sps:$4 sm:$0xff]  }
 0x27a   :  { %2974 = vmatprep.subr.bf16.mxu0 %v4817_v7  ;;  %v4871_v7 = vld [vmem:[#allocation6 + $0x2ec] ss:$16 sps:$4 sm:$0xff]  }
 0x27b   :  { %2204 = vmatmul.mubr.bf16.vlgmr.msra.gmra.mrb[8].mxu1 %v5299_v8  ;;  %v4766_v8 = vld [vmem:[#allocation6 + $0xc4] ss:$16 sps:$4 sm:$0xff]  }
 0x27c   :  { %2861 = vmatpush1.bf16.msra.mxu1 %v4728_v24  ;;  %v1693_v24 = vrot.slane %v5322_v22, %v5302_v10 }
 0x27d   :  { %2862 = vmatprep.subr.bf16.mxu1 %v4736_v25  ;;  %2975 = vmatpush1.bf16.msra.mxu0 %v4815_v11 }
 0x27e   :  { %2976 = vmatprep.subr.bf16.mxu0 %v4823_v14 }
 0x280   :  { %2863 = vmatpush1.bf16.msra.mxu1 %v4734_v26 }
 0x281   :  { %2864 = vmatprep.subr.bf16.mxu1 %v4742_v27  ;;  %2977 = vmatpush1.bf16.msra.mxu0 %v4821_v16  ;;  %v4866_v16 = vld [vmem:[#allocation6 + $0x2e0] ss:$16 sps:$4 sm:$0xff]  }
 0x282   :  { %2989 = vmatprep.subr.bf16.mxu0 %v4829_v18  ;;  %v4874_v18 = vld [vmem:[#allocation7 + $0x4] ss:$16 sps:$4 sm:$0xff]  }
 0x284   :  { %2865 = vmatpush1.bf16.msra.mxu1 %v4740_v28 }
 0x285   :  { %2866 = vmatprep.subr.bf16.mxu1 %v4748_v29 }
 0x288   :  { %2867 = vmatpush1.bf16.msra.mxu1 %v4746_v31 }
 0x289   :  { %2868 = vmatprep.subr.bf16.mxu1 %v4754_v32 }
 0x28c   :  { %2869 = vmatpush1.bf16.msra.mxu1 %v4752_v33 }
 0x28d   :  { %2870 = vmatprep.subr.bf16.mxu1 %v4760_v34 }
 0x290   :  { %2871 = vmatpush1.bf16.msra.mxu1 %v4758_v6 }
 0x291   :  { %2872 = vmatprep.subr.bf16.mxu1 %v4766_v8 }
 0x294   :  { %2873 = vmatpush1.bf16.msra.mxu1 %v4764_v36 }
 0x295   :  { %2874 = vmatprep.subr.bf16.mxu1 %v4772_v38  ;;  %v4824_v38 = vld [vmem:[#allocation6 + $0x200] ss:$16 sps:$4 sm:$0xff]  }
 0x298   :  { %2875 = vmatpush1.bf16.msra.mxu1 %v4770_v43  ;;  %v4830_v43 = vld [vmem:[#allocation6 + $0x220] ss:$16 sps:$4 sm:$0xff]  }
 0x299   :  { %2876 = vmatprep.subr.bf16.mxu1 %v4778_v45  ;;  %v4833_v45 = vld [vmem:[#allocation6 + $0x228] ss:$16 sps:$4 sm:$0xff]  }
 0x29c   :  { %2877 = vmatpush1.bf16.msra.mxu1 %v4776_v50  ;;  %v4836_v50 = vld [vmem:[#allocation6 + $0x240] ss:$16 sps:$4 sm:$0xff]  }
 0x29d   :  { %2878 = vmatprep.subr.bf16.mxu1 %v4784_v51  ;;  %v4839_v51 = vld [vmem:[#allocation6 + $0x248] ss:$16 sps:$4 sm:$0xff]  }
 0x2a0   :  { %2879 = vmatpush1.bf16.msra.mxu1 %v4782_v30  ;;  %v4842_v30 = vld [vmem:[#allocation6 + $0x260] ss:$16 sps:$4 sm:$0xff]  }
 0x2a1   :  { %2880 = vmatprep.subr.bf16.mxu1 %v4790_v53  ;;  %v4845_v53 = vld [vmem:[#allocation6 + $0x268] ss:$16 sps:$4 sm:$0xff]  }
 0x2a4   :  { %2881 = vmatpush1.bf16.msra.mxu1 %v4788_v56  ;;  %v4848_v56 = vld [vmem:[#allocation6 + $0x280] ss:$16 sps:$4 sm:$0xff]  }
 0x2a5   :  { %2882 = vmatprep.subr.bf16.mxu1 %v4796_v57  ;;  %v4856_v57 = vld [vmem:[#allocation6 + $0x2a4] ss:$16 sps:$4 sm:$0xff]  }
 0x2a8   :  { %2883 = vmatpush1.bf16.msra.mxu1 %v4794_v60  ;;  %v4857_v60 = vld [vmem:[#allocation6 + $0x2a8] ss:$16 sps:$4 sm:$0xff]  }
 0x2a9   :  { %2884 = vmatprep.subr.bf16.mxu1 %v4802_v61  ;;  %v4862_v61 = vld [vmem:[#allocation6 + $0x2c4] ss:$16 sps:$4 sm:$0xff]  }
 0x2ac   :  { %2885 = vmatpush1.bf16.msra.mxu1 %v4800_v0  ;;  %v1697_v0 = vrot.slane %v5322_v22, %v5304_v12 }
 0x2ad   :  { %2886 = vmatprep.subr.bf16.mxu1 %v4808_v1  ;;  %v4860_v1 = vld [vmem:[#allocation6 + $0x2c0] ss:$16 sps:$4 sm:$0xff]  }
 0x2b0   :  { %2887 = vmatpush1.bf16.msra.mxu1 %v4806_v3 }
 0x2b1   :  { %2888 = vmatprep.subr.bf16.mxu1 %v4814_v4  ;;  %v4868_v4 = vld [vmem:[#allocation6 + $0x2e4] ss:$16 sps:$4 sm:$0xff]  }
 0x2b4   :  { %2889 = vmatpush1.bf16.msra.mxu1 %v4812_v9 }
 0x2b5   :  { %2890 = vmatprep.subr.bf16.mxu1 %v4820_v13 }
 0x2b8   :  { %2891 = vmatpush1.bf16.msra.mxu1 %v4818_v15 }
 0x2b9   :  { %2903 = vmatprep.subr.bf16.mxu1 %v4826_v17  ;;  %v4869_v17 = vld [vmem:[#allocation6 + $0x2e8] ss:$16 sps:$4 sm:$0xff]  }
 0x30e   :  { %v5315_v19 = vpop.f32.mrb[8].mxu0 }
 0x30f   :  { %v4272_v20 = vpop.f32.mrb[9].mxu0 }
 0x310   :  { %v5317_v47 = vpop.f32.mrb[10].mxu0  ;;  %v4877_v20 = vld [vmem:[#allocation7 + $0xc] ss:$16 sps:$4 sm:$0xff]  }
 0x311   :  { %v4273_v21 = vpop.f32.mrb[11].mxu0 }
 0x32e   :  { %v2162_v25 = vpop.f32.mrb[4].mxu1 }
 0x32f   :  { %v4286_v26 = vadd.f32 %v2162_v25, %v1689_v23  ;;  %v2164_v27 = vpop.f32.mrb[5].mxu1 }
 0x330   :  { %v4287_v28 = vadd.f32 %v2164_v27, %v1693_v24  ;;  %v2166_v29 = vpop.f32.mrb[6].mxu1  ;;  %v4875_v27 = vld [vmem:[#allocation7 + $0x8] ss:$16 sps:$4 sm:$0xff]  }
 0x331   :  { %v4288_v31 = vadd.f32 %v2166_v29, %v1689_v23  ;;  %v2168_v32 = vpop.f32.mrb[7].mxu1  ;;  %v2253_v34 = vmax.f32 %v4286_v26, 0.0  ;;  %v4872_v26 = vld [vmem:[#allocation7] ss:$16 sps:$4 sm:$0xff]   ;;  %v4880_v29 = vld [vmem:[#allocation7 + $0x24] ss:$16 sps:$4 sm:$0xff]  }
 0x332   :  { %v4289_v33 = vadd.f32 %v2168_v32, %v1693_v24  ;;  %v2254_v8 = vmax.f32 %v4287_v28, 0.0  ;;  %v4878_v32 = vld [vmem:[#allocation7 + $0x20] ss:$16 sps:$4 sm:$0xff]  }
 0x333   :  { %v2256_v6 = vmax.f32 %v4288_v31, 0.0  ;;  %v4883_v31 = vld [vmem:[#allocation7 + $0x2c] ss:$16 sps:$4 sm:$0xff]  }
 0x334   :  { %v2257_v35 = vmax.f32 %v4289_v33, 0.0  ;;  %v4889_v33 = vld [vmem:[#allocation7 + $0x4c] ss:$16 sps:$4 sm:$0xff]  }
 0x335   :  { %v2259_v36 = vpack.c.bf16 %v2256_v6, %v2253_v34  ;;  %v4884_v34 = vld [vmem:[#allocation7 + $0x40] ss:$16 sps:$4 sm:$0xff]   ;;  %v4887_v6 = vld [vmem:[#allocation7 + $0x48] ss:$16 sps:$4 sm:$0xff]  }
 0x336   :  { %v2260_v37 = vpack.c.bf16 %v2257_v35, %v2254_v8  ;;  %v4892_v8 = vld [vmem:[#allocation7 + $0x64] ss:$16 sps:$4 sm:$0xff]   ;;  %v4895_v35 = vld [vmem:[#allocation7 + $0x6c] ss:$16 sps:$4 sm:$0xff]  }
 0x338   :  { %2892 = vmatprep.mubr.bf16.mxu1 %v2260_v37  ;;  %2978 = vmatprep.mubr.bf16.mxu0 %v2260_v37  ;;  %v4893_v37 = vld [vmem:[#allocation7 + $0x68] ss:$16 sps:$4 sm:$0xff]  }
 0x339   :  { %2893 = vmatmul.mubr.bf16.vlgmr.msra.gmra.mrb[12].mxu1 %v2259_v36  ;;  %2979 = vmatmul.mubr.bf16.vlgmr.msra.gmra.mrb[12].mxu0 %v2259_v36  ;;  %v4890_v36 = vld [vmem:[#allocation7 + $0x60] ss:$16 sps:$4 sm:$0xff]  }
 0x33a   :  { %2904 = vmatpush1.bf16.msra.mxu1 %v4824_v38  ;;  %2990 = vmatpush1.bf16.msra.mxu0 %v4827_v39  ;;  %v4898_v38 = vld [vmem:[#allocation7 + $0x84] ss:$16 sps:$4 sm:$0xff]   ;;  %v4901_v39 = vld [vmem:[#allocation7 + $0x8c] ss:$16 sps:$4 sm:$0xff]  }
 0x33b   :  { %2905 = vmatprep.subr.bf16.mxu1 %v4832_v40  ;;  %2991 = vmatprep.subr.bf16.mxu0 %v4835_v41  ;;  %v4896_v40 = vld [vmem:[#allocation7 + $0x80] ss:$16 sps:$4 sm:$0xff]   ;;  %v4899_v41 = vld [vmem:[#allocation7 + $0x88] ss:$16 sps:$4 sm:$0xff]  }
 0x33c   :  { %2935 = vmatprep.mubr.bf16.mxu1 %v5123_v46  ;;  %3021 = vmatprep.mubr.bf16.mxu0 %v5123_v46  ;;  %v4851_v46 = vld [vmem:[#allocation6 + $0x288] ss:$16 sps:$4 sm:$0xff]  }
 0x33e   :  { %2906 = vmatpush1.bf16.msra.mxu1 %v4830_v43  ;;  %2992 = vmatpush1.bf16.msra.mxu0 %v4833_v45  ;;  %v4904_v43 = vld [vmem:[#allocation7 + $0xa4] ss:$16 sps:$4 sm:$0xff]   ;;  %v4907_v45 = vld [vmem:[#allocation7 + $0xac] ss:$16 sps:$4 sm:$0xff]  }
 0x33f   :  { %2907 = vmatprep.subr.bf16.mxu1 %v4838_v48  ;;  %2993 = vmatprep.subr.bf16.mxu0 %v4841_v49  ;;  %v4902_v48 = vld [vmem:[#allocation7 + $0xa0] ss:$16 sps:$4 sm:$0xff]   ;;  %v4905_v49 = vld [vmem:[#allocation7 + $0xa8] ss:$16 sps:$4 sm:$0xff]  }
 0x342   :  { %2908 = vmatpush1.bf16.msra.mxu1 %v4836_v50  ;;  %2994 = vmatpush1.bf16.msra.mxu0 %v4839_v51  ;;  %v4910_v50 = vld [vmem:[#allocation7 + $0xc4] ss:$16 sps:$4 sm:$0xff]   ;;  %v4913_v51 = vld [vmem:[#allocation7 + $0xcc] ss:$16 sps:$4 sm:$0xff]  }
 0x343   :  { %2909 = vmatprep.subr.bf16.mxu1 %v4844_v5  ;;  %2995 = vmatprep.subr.bf16.mxu0 %v4847_v52  ;;  %v4908_v5 = vld [vmem:[#allocation7 + $0xc0] ss:$16 sps:$4 sm:$0xff]   ;;  %v4911_v52 = vld [vmem:[#allocation7 + $0xc8] ss:$16 sps:$4 sm:$0xff]  }
 0x346   :  { %2910 = vmatpush1.bf16.msra.mxu1 %v4842_v30  ;;  %2996 = vmatpush1.bf16.msra.mxu0 %v4845_v53  ;;  %v4916_v30 = vld [vmem:[#allocation7 + $0xe4] ss:$16 sps:$4 sm:$0xff]   ;;  %v4919_v53 = vld [vmem:[#allocation7 + $0xec] ss:$16 sps:$4 sm:$0xff]  }
 0x347   :  { %2911 = vmatprep.subr.bf16.mxu1 %v4850_v54  ;;  %2997 = vmatprep.subr.bf16.mxu0 %v4853_v55  ;;  %v4914_v54 = vld [vmem:[#allocation7 + $0xe0] ss:$16 sps:$4 sm:$0xff]   ;;  %v4917_v55 = vld [vmem:[#allocation7 + $0xe8] ss:$16 sps:$4 sm:$0xff]  }
 0x34a   :  { %2912 = vmatpush1.bf16.msra.mxu1 %v4848_v56  ;;  %2998 = vmatpush1.bf16.msra.mxu0 %v4851_v46  ;;  %v4922_v56 = vld [vmem:[#allocation7 + $0x104] ss:$16 sps:$4 sm:$0xff]   ;;  %v4925_v46 = vld [vmem:[#allocation7 + $0x10c] ss:$16 sps:$4 sm:$0xff]  }
 0x34b   :  { %2913 = vmatprep.subr.bf16.mxu1 %v4856_v57  ;;  %2999 = vmatprep.subr.bf16.mxu0 %v4859_v58  ;;  %v4920_v57 = vld [vmem:[#allocation7 + $0x100] ss:$16 sps:$4 sm:$0xff]   ;;  %v4923_v58 = vld [vmem:[#allocation7 + $0x108] ss:$16 sps:$4 sm:$0xff]  }
 0x34e   :  { %v4217_v63 = vpop.f32.mrb[8].mxu1  ;;  %2914 = vmatpush1.bf16.msra.mxu1 %v4854_v59  ;;  %3000 = vmatpush1.bf16.msra.mxu0 %v4857_v60  ;;  %v4928_v59 = vld [vmem:[#allocation7 + $0x124] ss:$16 sps:$4 sm:$0xff]   ;;  %v4931_v60 = vld [vmem:[#allocation7 + $0x12c] ss:$16 sps:$4 sm:$0xff]  }
 0x34f   :  { %v4218_v3 = vpop.f32.mrb[9].mxu1  ;;  %2915 = vmatprep.subr.bf16.mxu1 %v4862_v61  ;;  %3001 = vmatprep.subr.bf16.mxu0 %v4865_v62  ;;  %v4926_v61 = vld [vmem:[#allocation7 + $0x120] ss:$16 sps:$4 sm:$0xff]   ;;  %v4929_v62 = vld [vmem:[#allocation7 + $0x128] ss:$16 sps:$4 sm:$0xff]  }
 0x350   :  { %v4219_v9 = vadd.f32 %v4218_v3, %v4217_v63  ;;  %v4220_v11 = vpop.f32.mrb[10].mxu1  ;;  %v4934_v63 = vld [vmem:[#allocation7 + $0x144] ss:$16 sps:$4 sm:$0xff]  }
 0x351   :  { %v4221_v13 = vpop.f32.mrb[11].mxu1  ;;  %v4940_v3 = vld [vmem:[#allocation7 + $0x164] ss:$16 sps:$4 sm:$0xff]  }
 0x352   :  { %v2206_v14 = vadd.f32 %v4219_v9, %v1697_v0  ;;  %v4222_v15 = vadd.f32 %v4221_v13, %v4220_v11  ;;  %2916 = vmatpush1.bf16.msra.mxu1 %v4860_v1  ;;  %3002 = vmatpush1.bf16.msra.mxu0 %v4863_v2  ;;  %v4932_v1 = vld [vmem:[#allocation7 + $0x140] ss:$16 sps:$4 sm:$0xff]   ;;  %v4935_v2 = vld [vmem:[#allocation7 + $0x148] ss:$16 sps:$4 sm:$0xff]   ;;  %v4946_v11 = vld [vmem:[#allocation7 + $0x184] ss:$16 sps:$4 sm:$0xff]  }
 0x353   :  { %2917 = vmatprep.subr.bf16.mxu1 %v4868_v4  ;;  %3003 = vmatprep.subr.bf16.mxu0 %v4871_v7  ;;  %v4943_v4 = vld [vmem:[#allocation7 + $0x16c] ss:$16 sps:$4 sm:$0xff]   ;;  %v4938_v7 = vld [vmem:[#allocation7 + $0x160] ss:$16 sps:$4 sm:$0xff]   ;;  %v4941_v9 = vld [vmem:[#allocation7 + $0x168] ss:$16 sps:$4 sm:$0xff]  }
 0x354   :  { %v2247_v21 = vadd.f32 %v5315_v19, %v2206_v14  ;;  %v2209_v22 = vadd.f32 %v4222_v15, %v1697_v0  ;;  %v4881_v19 = vld [vmem:[#allocation7 + $0x28] ss:$16 sps:$4 sm:$0xff]   ;;  %v4937_v0 = vld [vmem:[#allocation7 + $0x14c] ss:$16 sps:$4 sm:$0xff]   ;;  %v4944_v14 = vld [vmem:[#allocation7 + $0x180] ss:$16 sps:$4 sm:$0xff]  }
 0x355   :  { %v4949_v13 = vld [vmem:[#allocation7 + $0x18c] ss:$16 sps:$4 sm:$0xff]   ;;  %v4947_v15 = vld [vmem:[#allocation7 + $0x188] ss:$16 sps:$4 sm:$0xff]  }
 0x356   :  { %v2250_v23 = vadd.f32 %v5317_v47, %v2209_v22  ;;  %2918 = vmatpush1.bf16.msra.mxu1 %v4866_v16  ;;  %3004 = vmatpush1.bf16.msra.mxu0 %v4869_v17  ;;  %v2255_v24 = vmax.f32 %v2247_v21, 0.0  ;;  %v4886_v47 = vld [vmem:[#allocation7 + $0x44] ss:$16 sps:$4 sm:$0xff]   ;;  %v4955_v17 = vld [vmem:[#allocation7 + $0x1ac] ss:$16 sps:$4 sm:$0xff]  }
 0x357   :  { %3444 = vmatprep.subr.bf16.mxu1 %v4874_v18  ;;  %3487 = vmatprep.subr.bf16.mxu0 %v4877_v20  ;;  %v4952_v16 = vld [vmem:[#allocation7 + $0x1a4] ss:$16 sps:$4 sm:$0xff]   ;;  %v4950_v18 = vld [vmem:[#allocation7 + $0x1a0] ss:$16 sps:$4 sm:$0xff]   ;;  %v4953_v20 = vld [vmem:[#allocation7 + $0x1a8] ss:$16 sps:$4 sm:$0xff]  }
 0x358   :  { %v2258_v25 = vmax.f32 %v2250_v23, 0.0  ;;  %v4958_v21 = vld [vmem:[#allocation7 + $0x1c4] ss:$16 sps:$4 sm:$0xff]   ;;  %v4961_v22 = vld [vmem:[#allocation7 + $0x1cc] ss:$16 sps:$4 sm:$0xff]  }
 0x359   :  { %v4956_v23 = vld [vmem:[#allocation7 + $0x1c0] ss:$16 sps:$4 sm:$0xff]  }
 0x35a   :  { %v2261_v28 = vpack.c.bf16 %v2258_v25, %v2255_v24  ;;  %v4959_v24 = vld [vmem:[#allocation7 + $0x1c8] ss:$16 sps:$4 sm:$0xff]   ;;  %v4964_v25 = vld [vmem:[#allocation7 + $0x1e4] ss:$16 sps:$4 sm:$0xff]  }
 0x35c   :  { %2936 = vmatmul.mubr.bf16.vlgmr.msra.gmra.mrb[12].mxu1 %v2261_v28  ;;  %3022 = vmatmul.mubr.bf16.vlgmr.msra.gmra.mrb[12].mxu0 %v2261_v28  ;;  %v4965_v28 = vld [vmem:[#allocation7 + $0x1e8] ss:$16 sps:$4 sm:$0xff]  }
 0x35d   :  { %3445 = vmatpush1.bf16.msra.mxu1 %v4872_v26  ;;  %3488 = vmatpush1.bf16.msra.mxu0 %v4875_v27  ;;  %v4967_v26 = vld [vmem:[#allocation7 + $0x1ec] ss:$16 sps:$4 sm:$0xff]   ;;  %v4962_v27 = vld [vmem:[#allocation7 + $0x1e0] ss:$16 sps:$4 sm:$0xff]  }
 0x35e   :  { %3446 = vmatprep.subr.bf16.mxu1 %v4880_v29  ;;  %3489 = vmatprep.subr.bf16.mxu0 %v4883_v31  ;;  %v4968_v29 = vld [vmem:[#allocation9 + $0x40] sm:$0xff]  }
 0x35f   :  { %v2358_v31 = vld [vmem:[%s5360_s6] sm:$0xf] }
 0x361   :  { %3447 = vmatpush1.bf16.msra.mxu1 %v4878_v32  ;;  %3490 = vmatpush1.bf16.msra.mxu0 %v4881_v19  ;;  %v2363_v32 = vrot.slane %v2358_v31, %v5288_v42  ;;  %v2371_v19 = vrot.slane %v2358_v31, %v5304_v12 }
 0x362   :  { %3448 = vmatprep.subr.bf16.mxu1 %v4886_v47  ;;  %3491 = vmatprep.subr.bf16.mxu0 %v4889_v33  ;;  %v2367_v47 = vrot.slane %v2358_v31, %v5302_v10  ;;  %v2375_v33 = vrot.slane %v2358_v31, %v5293_v44 }
 0x365   :  { %3449 = vmatpush1.bf16.msra.mxu1 %v4884_v34  ;;  %3492 = vmatpush1.bf16.msra.mxu0 %v4887_v6 }
 0x366   :  { %3450 = vmatprep.subr.bf16.mxu1 %v4892_v8  ;;  %3493 = vmatprep.subr.bf16.mxu0 %v4895_v35 }
 0x369   :  { %3451 = vmatpush1.bf16.msra.mxu1 %v4890_v36  ;;  %3494 = vmatpush1.bf16.msra.mxu0 %v4893_v37 }
 0x36a   :  { %3452 = vmatprep.subr.bf16.mxu1 %v4898_v38  ;;  %3495 = vmatprep.subr.bf16.mxu0 %v4901_v39 }
 0x36d   :  { %3453 = vmatpush1.bf16.msra.mxu1 %v4896_v40  ;;  %3496 = vmatpush1.bf16.msra.mxu0 %v4899_v41 }
 0x36e   :  { %3454 = vmatprep.subr.bf16.mxu1 %v4904_v43  ;;  %3497 = vmatprep.subr.bf16.mxu0 %v4907_v45 }
 0x371   :  { %3455 = vmatpush1.bf16.msra.mxu1 %v4902_v48  ;;  %3498 = vmatpush1.bf16.msra.mxu0 %v4905_v49 }
 0x372   :  { %3456 = vmatprep.subr.bf16.mxu1 %v4910_v50  ;;  %3499 = vmatprep.subr.bf16.mxu0 %v4913_v51 }
 0x375   :  { %3457 = vmatpush1.bf16.msra.mxu1 %v4908_v5  ;;  %3500 = vmatpush1.bf16.msra.mxu0 %v4911_v52 }
 0x376   :  { %3458 = vmatprep.subr.bf16.mxu1 %v4916_v30  ;;  %3501 = vmatprep.subr.bf16.mxu0 %v4919_v53 }
 0x379   :  { %3459 = vmatpush1.bf16.msra.mxu1 %v4914_v54  ;;  %3502 = vmatpush1.bf16.msra.mxu0 %v4917_v55 }
 0x37a   :  { %3460 = vmatprep.subr.bf16.mxu1 %v4922_v56  ;;  %3503 = vmatprep.subr.bf16.mxu0 %v4925_v46  ;;  %v4969_v56 = vld [vmem:[#allocation9] sm:$0xff]   ;;  %v4970_v46 = vld [vmem:[#allocation9 + $0x48] sm:$0xff]  }
 0x37d   :  { %3461 = vmatpush1.bf16.msra.mxu1 %v4920_v57  ;;  %3504 = vmatpush1.bf16.msra.mxu0 %v4923_v58  ;;  %v4971_v57 = vld [vmem:[#allocation9 + $0x8] sm:$0xff]   ;;  %v4972_v58 = vld [vmem:[#allocation9 + $0x50] sm:$0xff]  }
 0x37e   :  { %3462 = vmatprep.subr.bf16.mxu1 %v4928_v59  ;;  %3505 = vmatprep.subr.bf16.mxu0 %v4931_v60  ;;  %v4973_v59 = vld [vmem:[#allocation9 + $0x10] sm:$0xff]   ;;  %v4974_v60 = vld [vmem:[#allocation9 + $0x58] sm:$0xff]  }
 0x381   :  { %3463 = vmatpush1.bf16.msra.mxu1 %v4926_v61  ;;  %3506 = vmatpush1.bf16.msra.mxu0 %v4929_v62  ;;  %v4975_v61 = vld [vmem:[#allocation9 + $0x18] sm:$0xff]   ;;  %v4976_v62 = vld [vmem:[#allocation9 + $0x60] sm:$0xff]  }
 0x382   :  { %3464 = vmatprep.subr.bf16.mxu1 %v4934_v63  ;;  %3507 = vmatprep.subr.bf16.mxu0 %v4937_v0  ;;  %v4977_v63 = vld [vmem:[#allocation9 + $0x20] sm:$0xff]   ;;  %v4978_v0 = vld [vmem:[#allocation9 + $0x68] sm:$0xff]  }
 0x385   :  { %3465 = vmatpush1.bf16.msra.mxu1 %v4932_v1  ;;  %3508 = vmatpush1.bf16.msra.mxu0 %v4935_v2  ;;  %v4979_v1 = vld [vmem:[#allocation9 + $0x28] sm:$0xff]   ;;  %v4980_v2 = vld [vmem:[#allocation9 + $0x70] sm:$0xff]  }
 0x386   :  { %3466 = vmatprep.subr.bf16.mxu1 %v4940_v3  ;;  %3509 = vmatprep.subr.bf16.mxu0 %v4943_v4  ;;  %v4981_v3 = vld [vmem:[#allocation9 + $0x30] sm:$0xff]   ;;  %v4982_v4 = vld [vmem:[#allocation9 + $0x78] sm:$0xff]  }
 0x389   :  { %3467 = vmatpush1.bf16.msra.mxu1 %v4938_v7  ;;  %3510 = vmatpush1.bf16.msra.mxu0 %v4941_v9  ;;  %v4983_v7 = vld [vmem:[#allocation9 + $0x38] sm:$0xff]   ;;  %v3102_v9 = vld [vmem:[%s5362_s8] sm:$0xf] }
 0x38a   :  { %3468 = vmatprep.subr.bf16.mxu1 %v4946_v11  ;;  %3511 = vmatprep.subr.bf16.mxu0 %v4949_v13  ;;  %v3107_v11 = vrot.slane %v3102_v9, %v5288_v42  ;;  %v3115_v13 = vrot.slane %v3102_v9, %v5304_v12 }
 0x38d   :  { %3469 = vmatpush1.bf16.msra.mxu1 %v4944_v14  ;;  %3512 = vmatpush1.bf16.msra.mxu0 %v4947_v15  ;;  %v3111_v14 = vrot.slane %v3102_v9, %v5302_v10  ;;  %v3119_v15 = vrot.slane %v3102_v9, %v5293_v44 }
 0x38e   :  { %3470 = vmatprep.subr.bf16.mxu1 %v4952_v16  ;;  %3513 = vmatprep.subr.bf16.mxu0 %v4955_v17 }
 0x391   :  { %3471 = vmatpush1.bf16.msra.mxu1 %v4950_v18  ;;  %3514 = vmatpush1.bf16.msra.mxu0 %v4953_v20 }
 0x392   :  { %3472 = vmatprep.subr.bf16.mxu1 %v4958_v21  ;;  %3515 = vmatprep.subr.bf16.mxu0 %v4961_v22 }
 0x395   :  { %3473 = vmatpush1.bf16.msra.mxu1 %v4956_v23  ;;  %3516 = vmatpush1.bf16.msra.mxu0 %v4959_v24 }
 0x396   :  { %3474 = vmatprep.subr.bf16.mxu1 %v4964_v25  ;;  %3517 = vmatprep.subr.bf16.mxu0 %v4967_v26 }
 0x399   :  { %3475 = vmatpush1.bf16.msra.mxu1 %v4962_v27  ;;  %3518 = vmatpush1.bf16.msra.mxu0 %v4965_v28 }
 0x39a   :  { %4232 = vmatprep.subr.bf16.mxu1 %v4968_v29 }
 0x42f   :  { %v2937_v34 = vpop.f32.mrb[12].mxu1  ;;  %v3023_v6 = vpop.f32.mrb[12].mxu0 }
 0x430   :  { %v4290_v8 = vadd.f32 %v2937_v34, %v2363_v32  ;;  %v4294_v35 = vadd.f32 %v3023_v6, %v2371_v19  ;;  %v2939_v36 = vpop.f32.mrb[13].mxu1  ;;  %v3025_v37 = vpop.f32.mrb[13].mxu0 }
 0x431   :  { %v4291_v38 = vadd.f32 %v2939_v36, %v2367_v47  ;;  %v4295_v39 = vadd.f32 %v3025_v37, %v2375_v33  ;;  %v2941_v40 = vpop.f32.mrb[14].mxu1  ;;  %v3027_v41 = vpop.f32.mrb[14].mxu0  ;;  %v4173_v37 = vld [vmem:[%s5364_s10] ss:$0 sm:$0xff] }
 0x432   :  { %v3032_v43 = vmax.f32 %v4290_v8, %v4294_v35  ;;  %v4292_v45 = vadd.f32 %v2941_v40, %v2363_v32  ;;  %v4296_v48 = vadd.f32 %v3027_v41, %v2371_v19  ;;  %v2943_v49 = vpop.f32.mrb[15].mxu1  ;;  %v3029_v50 = vpop.f32.mrb[15].mxu0 }
 0x433   :  { %v3033_v51 = vmax.f32 %v4291_v38, %v4295_v39  ;;  %v4293_v5 = vadd.f32 %v2943_v49, %v2367_v47  ;;  %v4297_v52 = vadd.f32 %v3029_v50, %v2375_v33 }
 0x434   :  { %v3034_v30 = vmax.f32 %v4292_v45, %v4296_v48 }
 0x435   :  { %v3035_v53 = vmax.f32 %v4293_v5, %v4297_v52 }
 0x436   :  { %v3036_v54 = vpack.c.bf16 %v3034_v30, %v3032_v43 }
 0x437   :  { %v3037_v55 = vpack.c.bf16 %v3035_v53, %v3033_v51 }
 0x439   :  { %3476 = vmatprep.mubr.bf16.mxu1 %v3037_v55  ;;  %3519 = vmatprep.mubr.bf16.mxu0 %v3037_v55 }
 0x43a   :  { %3477 = vmatmul.mubr.bf16.vlgmr.msra.gmra.mrb[16].mxu1 %v3036_v54  ;;  %3520 = vmatmul.mubr.bf16.vlgmr.msra.gmra.mrb[16].mxu0 %v3036_v54 }
 0x43b   :  { %4233 = vmatpush3.bf16.msra.mxu1 %v4969_v56 }
 0x43c   :  { %4234 = vmatprep.subr.bf16.mxu1 %v4970_v46 }
 0x43f   :  { %4235 = vmatpush3.bf16.msra.mxu1 %v4971_v57 }
 0x440   :  { %4236 = vmatprep.subr.bf16.mxu1 %v4972_v58 }
 0x443   :  { %4237 = vmatpush3.bf16.msra.mxu1 %v4973_v59 }
 0x444   :  { %4238 = vmatprep.subr.bf16.mxu1 %v4974_v60 }
 0x447   :  { %4239 = vmatpush3.bf16.msra.mxu1 %v4975_v61 }
 0x448   :  { %4240 = vmatprep.subr.bf16.mxu1 %v4976_v62 }
 0x44b   :  { %4241 = vmatpush3.bf16.msra.mxu1 %v4977_v63 }
 0x44c   :  { %4242 = vmatprep.subr.bf16.mxu1 %v4978_v0 }
 0x44f   :  { %4243 = vmatpush3.bf16.msra.mxu1 %v4979_v1 }
 0x450   :  { %4244 = vmatprep.subr.bf16.mxu1 %v4980_v2 }
 0x453   :  { %4245 = vmatpush3.bf16.msra.mxu1 %v4981_v3 }
 0x454   :  { %4246 = vmatprep.subr.bf16.mxu1 %v4982_v4 }
 0x457   :  { %4247 = vmatpush3.bf16.msra.mxu1 %v4983_v7 }
 0x50d   :  { %v3478_v16 = vpop.f32.mrb[16].mxu1  ;;  %v3521_v17 = vpop.f32.mrb[16].mxu0 }
 0x50e   :  { %v3479_v18 = vadd.f32 %v3478_v16, %v3107_v11  ;;  %v3522_v20 = vadd.f32 %v3521_v17, %v3115_v13  ;;  %v3480_v21 = vpop.f32.mrb[17].mxu1  ;;  %v3523_v22 = vpop.f32.mrb[17].mxu0 }
 0x50f   :  { %v3481_v23 = vadd.f32 %v3480_v21, %v3111_v14  ;;  %v3524_v24 = vadd.f32 %v3523_v22, %v3119_v15  ;;  %v3482_v25 = vpop.f32.mrb[18].mxu1  ;;  %v3525_v26 = vpop.f32.mrb[18].mxu0 }
 0x510   :  { %v3530_v27 = vmax.f32 %v3479_v18, %v3522_v20  ;;  %v3483_v28 = vadd.f32 %v3482_v25, %v3107_v11  ;;  %v3526_v29 = vadd.f32 %v3525_v26, %v3115_v13  ;;  %v3484_v42 = vpop.f32.mrb[19].mxu1  ;;  %v3527_v31 = vpop.f32.mrb[19].mxu0 }
 0x511   :  { %v3531_v12 = vmax.f32 %v3481_v23, %v3524_v24  ;;  %v3485_v32 = vadd.f32 %v3484_v42, %v3111_v14  ;;  %v3528_v10 = vadd.f32 %v3527_v31, %v3119_v15 }
 0x512   :  { %v3532_v19 = vmax.f32 %v3483_v28, %v3526_v29  ;;  %v3534_v47 = vmax.f32 %v3530_v27, 0.0 }
 0x513   :  { %v3533_v44 = vmax.f32 %v3485_v32, %v3528_v10  ;;  %v3535_v34 = vmax.f32 %v3531_v12, 0.0 }
 0x514   :  { %v3536_v33 = vmax.f32 %v3532_v19, 0.0 }
 0x515   :  { %v3537_v6 = vmax.f32 %v3533_v44, 0.0 }
 0x516   :  { %v3538_v8 = vpack.c.bf16 %v3536_v33, %v3534_v47 }
 0x517   :  { %v3539_v35 = vpack.c.bf16 %v3537_v6, %v3535_v34 }
 0x519   :  { %3707 = vmatprep.mubr.bf16.mxu1 %v3539_v35 }
 0x51a   :  { %3708 = vmatmul.mubr.bf16.vlgmr.msra.gmra.mrb[20].mxu1 %v3538_v8 }
 0x5ed   :  { %v4248_v36 = vpop.f32.mrb[20].mxu1 }
 0x5ee   :  { %v4249_v38 = vpop.f32.mrb[21].mxu1 }
 0x5ef   :  { %v4250_v39 = vadd.f32 %v4249_v38, %v4248_v36  ;;  %v4251_v40 = vpop.f32.mrb[22].mxu1 }
 0x5f0   :  { %v4252_v41 = vpop.f32.mrb[23].mxu1 }
 0x5f1   :  { %v3710_v43 = vadd.f32 %v4250_v39, %v4173_v37  ;;  %v4253_v45 = vadd.f32 %v4252_v41, %v4251_v40 }
 0x5f3   :  { %v4190_v48 = vmul.f32 -1.442695, %v3710_v43  ;;  %v3713_v49 = vadd.f32 %v4253_v45, %v4173_v37 }
 0x5f5   :  { %4984 = vpow2.f32 %v4190_v48  ;;  %v4191_v50 = vmul.f32 -1.442695, %v3713_v49 }
 0x5f7   :  { %4986 = vpow2.f32 %v4191_v50 }
 0x5ff   :  { %v4985_v51 = vpop.eup %4984 }
 0x600   :  { %v3722_v5 = vadd.f32 1.0, %v4985_v51 }
 0x601   :  { %v4987_v52 = vpop.eup %4986 }
 0x602   :  { %v3723_v30 = vadd.f32 1.0, %v4987_v52  ;;  %4988 = vrcp.f32 %v3722_v5 }
 0x604   :  { %4990 = vrcp.f32 %v3723_v30 }
 0x60c   :  { %v4989_v53 = vpop.eup %4988 }
 0x60e   :  { %v4991_v54 = vpop.eup %4990 }
 0x60f   :  { %v4199_v55 = vpack.c.bf16 %v4991_v54, %v4989_v53 }
 0x611   :  { %4200 = vst [vmem:[%s5365_s11] sm:$0xff] %v4199_v55  }
 0x612   :  { %3742 = vsyncpa [#allocation3], 1 }
 0x613   :  { %3743 = vsyncpa [#allocation5], 1 }
 0x614   :  { %3744 = vsyncpa [#allocation8], 1 }

</bundles_post_ra>
